<compile_context>
chip_gen: v5e
topology: v5e:2x2
jax: 0.10.0
libtpu: 0.0.40
codegen_flags: <defaults>
</compile_context>

<pallas_src>
import functools
import math

import jax
import jax.numpy as jnp
from jax import lax
from jax.experimental import pallas as pl
from jax.experimental.pallas import tpu as pltpu

SCALE = math.sqrt(0.5)  # torch.sqrt(torch.FloatTensor([0.5]))

# small hyperparameters consistent with the ConvS2S encoder/decoder
INPUT_DIM = 100
OUTPUT_DIM = 100
EMB_DIM = 32
HID_DIM = 32
ENC_LAYERS = 2
DEC_LAYERS = 2
KERNEL_SIZE = 3          # must be odd for the encoder's 'same' padding
MAX_LEN = 16
TRG_PAD_IDX = 1
V_PAD = 128              # fc_out padded to a lane-dense 128-wide output slab


# ------------------------------ Pallas kernels ------------------------------

def _encoder_kernel(emb_ref, we2h_ref, be2h_ref,
                    wa_ref, wg_ref, ba_ref, bg_ref,
                    wh2e_ref, bh2e_ref,
                    conved_ref, combined_ref,
                    pad_ref,
                    *, L, K, NL, H):
    """Whole encoder stack for one batch element; everything stays in VMEM."""
    pad = (K - 1) // 2
    emb = emb_ref[0]                                             # [L, E]
    # emb2hid
    x = (jnp.dot(emb, we2h_ref[...], preferred_element_type=jnp.float32)
         + be2h_ref[...])                                        # [L, H]
    for l in range(NL):                                          # static unroll
        wa_l = wa_ref[l]                                         # [K, H, H]
        wg_l = wg_ref[l]
        # 'same' zero padding held in a reused VMEM scratch buffer
        pad_ref[...] = jnp.zeros((L + K - 1, H), jnp.float32)
        pad_ref[pad:pad + L, :] = x
        acc_a = jnp.zeros((L, H), jnp.float32)
        acc_g = jnp.zeros((L, H), jnp.float32)
        for k in range(K):                                       # static taps
            win = pad_ref[k:k + L, :]
            acc_a = acc_a + jnp.dot(win, wa_l[k],
                                    preferred_element_type=jnp.float32)
            acc_g = acc_g + jnp.dot(win, wg_l[k],
                                    preferred_element_type=jnp.float32)
        acc_a = acc_a + ba_ref[l]
        acc_g = acc_g + bg_ref[l]
        conved = acc_a * jax.nn.sigmoid(acc_g)                   # F.glu (split halves)
        x = (conved + x) * SCALE                                 # fused residual scale
    # hid2emb + combined, fused epilogue
    conved_e = (jnp.dot(x, wh2e_ref[...], preferred_element_type=jnp.float32)
                + bh2e_ref[...])                                 # [L, E]
    conved_ref[0] = conved_e
    combined_ref[0] = (conved_e + emb) * SCALE


def _decoder_kernel(emb_ref, encc_ref, encm_ref,
                    we2h_ref, be2h_ref,
                    wa_ref, wg_ref, ba_ref, bg_ref,
                    wah2e_ref, bah2e_ref, wae2h_ref, bae2h_ref,
                    wh2e_ref, bh2e_ref, wfco_ref, bfco_ref,
                    out_ref, attn_ref,
                    pad_ref,
                    *, L, K, NL, H):
    """Whole decoder stack (conv + GLU + attention + fc_out) for one batch element."""
    emb = emb_ref[0]                                             # [L, E]
    encc = encc_ref[0]                                           # [Ls, E]
    encm = encm_ref[0]                                           # [Ls, E]
    x = (jnp.dot(emb, we2h_ref[...], preferred_element_type=jnp.float32)
         + be2h_ref[...])                                        # [L, H]
    attn = None
    for l in range(NL):                                          # static unroll
        wa_l = wa_ref[l]                                         # [K, H, H]
        wg_l = wg_ref[l]
        # causal left pad filled with trg_pad_idx value (matches .fill_(trg_pad_idx))
        pad_ref[...] = jnp.full((L + K - 1, H), float(TRG_PAD_IDX), jnp.float32)
        pad_ref[K - 1:K - 1 + L, :] = x
        acc_a = jnp.zeros((L, H), jnp.float32)
        acc_g = jnp.zeros((L, H), jnp.float32)
        for k in range(K):
            win = pad_ref[k:k + L, :]
            acc_a = acc_a + jnp.dot(win, wa_l[k],
                                    preferred_element_type=jnp.float32)
            acc_g = acc_g + jnp.dot(win, wg_l[k],
                                    preferred_element_type=jnp.float32)
        acc_a = acc_a + ba_ref[l]
        acc_g = acc_g + bg_ref[l]
        conved = acc_a * jax.nn.sigmoid(acc_g)                   # [L, H]
        # --- calculate_attention, fused ---
        ce = (jnp.dot(conved, wah2e_ref[...], preferred_element_type=jnp.float32)
              + bah2e_ref[...])                                  # [L, E]
        comb = (ce + emb) * SCALE
        # energy = comb @ encc^T without materializing a transpose
        energy = lax.dot_general(comb, encc, (((1,), (1,)), ((), ())),
                                 preferred_element_type=jnp.float32)   # [L, Ls]
        energy = energy - jnp.max(energy, axis=-1, keepdims=True)
        p = jnp.exp(energy)
        attn = p * pl.reciprocal(jnp.sum(p, axis=-1, keepdims=True), approx=True)
        attended = jnp.dot(attn, encm, preferred_element_type=jnp.float32)     # [L, E]
        attended = (jnp.dot(attended, wae2h_ref[...],
                            preferred_element_type=jnp.float32)
                    + bae2h_ref[...])                            # [L, H]
        conved = (conved + attended) * SCALE
        x = (conved + x) * SCALE                                 # fused residual scale
    attn_ref[0] = attn                                           # attention of last layer
    # hid2emb + fc_out (lane-dense 128-wide slab), fused epilogue
    conved_e = (jnp.dot(x, wh2e_ref[...], preferred_element_type=jnp.float32)
                + bh2e_ref[...])                                 # [L, E]
    out_ref[0] = (jnp.dot(conved_e, wfco_ref[...],
                          preferred_element_type=jnp.float32)
                  + bfco_ref[...])                               # [L, V_PAD]


# ------------------------------ model (JAX glue) ------------------------------

def init_params(key):
    ks = iter(jax.random.split(key, 64))

    def nrm(shape, scale=0.1):
        return scale * jax.random.normal(next(ks), shape, dtype=jnp.float32)

    def conv_stack(n):
        # GLU weight split into the two halves up front (no lane-32 slicing in-kernel)
        return dict(
            conv_wa=nrm((n, KERNEL_SIZE, HID_DIM, HID_DIM)),
            conv_wg=nrm((n, KERNEL_SIZE, HID_DIM, HID_DIM)),
            conv_ba=nrm((n, 1, HID_DIM)),
            conv_bg=nrm((n, 1, HID_DIM)),
        )

    enc = dict(
        tok_emb=nrm((INPUT_DIM, EMB_DIM)),
        pos_emb=nrm((MAX_LEN, EMB_DIM)),
        emb2hid_w=nrm((EMB_DIM, HID_DIM)), emb2hid_b=nrm((1, HID_DIM)),
        hid2emb_w=nrm((HID_DIM, EMB_DIM)), hid2emb_b=nrm((1, EMB_DIM)),
        **conv_stack(ENC_LAYERS),
    )
    fc_w = nrm((EMB_DIM, OUTPUT_DIM))
    fc_b = nrm((1, OUTPUT_DIM))
    dec = dict(
        tok_emb=nrm((OUTPUT_DIM, EMB_DIM)),
        pos_emb=nrm((MAX_LEN, EMB_DIM)),
        emb2hid_w=nrm((EMB_DIM, HID_DIM)), emb2hid_b=nrm((1, HID_DIM)),
        hid2emb_w=nrm((HID_DIM, EMB_DIM)), hid2emb_b=nrm((1, EMB_DIM)),
        attn_hid2emb_w=nrm((HID_DIM, EMB_DIM)), attn_hid2emb_b=nrm((1, EMB_DIM)),
        attn_emb2hid_w=nrm((EMB_DIM, HID_DIM)), attn_emb2hid_b=nrm((1, HID_DIM)),
        # zero-pad fc_out to 128 lanes for dense stores; logits sliced outside.
        fc_out_w=jnp.pad(fc_w, ((0, 0), (0, V_PAD - OUTPUT_DIM))),
        fc_out_b=jnp.pad(fc_b, ((0, 0), (0, V_PAD - OUTPUT_DIM))),
        **conv_stack(DEC_LAYERS),
    )
    return dict(encoder=enc, decoder=dec)


def encoder_forward(p, src):
    B, Ls = src.shape
    tok = p['tok_emb'][src]                                   # embedding gather (glue)
    pos = p['pos_emb'][jnp.arange(Ls)][None, :, :]
    embedded = tok + pos                                      # dropout == identity (eval)
    kern = functools.partial(_encoder_kernel, L=Ls, K=KERNEL_SIZE,
                             NL=ENC_LAYERS, H=HID_DIM)
    conved, combined = pl.pallas_call(
        kern,
        out_shape=(jax.ShapeDtypeStruct((B, Ls, EMB_DIM), jnp.float32),
                   jax.ShapeDtypeStruct((B, Ls, EMB_DIM), jnp.float32)),
        grid=(B,),
        in_specs=[
            pl.BlockSpec((1, Ls, EMB_DIM), lambda b: (b, 0, 0)),
            pl.BlockSpec((EMB_DIM, HID_DIM), lambda b: (0, 0)),
            pl.BlockSpec((1, HID_DIM), lambda b: (0, 0)),
            pl.BlockSpec((ENC_LAYERS, KERNEL_SIZE, HID_DIM, HID_DIM),
                         lambda b: (0, 0, 0, 0)),
            pl.BlockSpec((ENC_LAYERS, KERNEL_SIZE, HID_DIM, HID_DIM),
                         lambda b: (0, 0, 0, 0)),
            pl.BlockSpec((ENC_LAYERS, 1, HID_DIM), lambda b: (0, 0, 0)),
            pl.BlockSpec((ENC_LAYERS, 1, HID_DIM), lambda b: (0, 0, 0)),
            pl.BlockSpec((HID_DIM, EMB_DIM), lambda b: (0, 0)),
            pl.BlockSpec((1, EMB_DIM), lambda b: (0, 0)),
        ],
        out_specs=(pl.BlockSpec((1, Ls, EMB_DIM), lambda b: (b, 0, 0)),
                   pl.BlockSpec((1, Ls, EMB_DIM), lambda b: (b, 0, 0))),
        scratch_shapes=[pltpu.VMEM((Ls + KERNEL_SIZE - 1, HID_DIM), jnp.float32)],
        compiler_params=pltpu.CompilerParams(
            dimension_semantics=("parallel",)),        # batch across TCs on v7x
    )(embedded, p['emb2hid_w'], p['emb2hid_b'],
      p['conv_wa'], p['conv_wg'], p['conv_ba'], p['conv_bg'],
      p['hid2emb_w'], p['hid2emb_b'])
    return conved, combined


def decoder_forward(p, trg, enc_conved, enc_combined):
    B, Lt = trg.shape
    Ls = enc_conved.shape[1]
    tok = p['tok_emb'][trg]
    pos = p['pos_emb'][jnp.arange(Lt)][None, :, :]
    embedded = tok + pos                                      # dropout == identity (eval)
    kern = functools.partial(_decoder_kernel, L=Lt, K=KERNEL_SIZE,
                             NL=DEC_LAYERS, H=HID_DIM)
    logits, attn = pl.pallas_call(
        kern,
        out_shape=(jax.ShapeDtypeStruct((B, Lt, V_PAD), jnp.float32),
                   jax.ShapeDtypeStruct((B, Lt, Ls), jnp.float32)),
        grid=(B,),
        in_specs=[
            pl.BlockSpec((1, Lt, EMB_DIM), lambda b: (b, 0, 0)),
            pl.BlockSpec((1, Ls, EMB_DIM), lambda b: (b, 0, 0)),
            pl.BlockSpec((1, Ls, EMB_DIM), lambda b: (b, 0, 0)),
            pl.BlockSpec((EMB_DIM, HID_DIM), lambda b: (0, 0)),
            pl.BlockSpec((1, HID_DIM), lambda b: (0, 0)),
            pl.BlockSpec((DEC_LAYERS, KERNEL_SIZE, HID_DIM, HID_DIM),
                         lambda b: (0, 0, 0, 0)),
            pl.BlockSpec((DEC_LAYERS, KERNEL_SIZE, HID_DIM, HID_DIM),
                         lambda b: (0, 0, 0, 0)),
            pl.BlockSpec((DEC_LAYERS, 1, HID_DIM), lambda b: (0, 0, 0)),
            pl.BlockSpec((DEC_LAYERS, 1, HID_DIM), lambda b: (0, 0, 0)),
            pl.BlockSpec((HID_DIM, EMB_DIM), lambda b: (0, 0)),
            pl.BlockSpec((1, EMB_DIM), lambda b: (0, 0)),
            pl.BlockSpec((EMB_DIM, HID_DIM), lambda b: (0, 0)),
            pl.BlockSpec((1, HID_DIM), lambda b: (0, 0)),
            pl.BlockSpec((HID_DIM, EMB_DIM), lambda b: (0, 0)),
            pl.BlockSpec((1, EMB_DIM), lambda b: (0, 0)),
            pl.BlockSpec((EMB_DIM, V_PAD), lambda b: (0, 0)),
            pl.BlockSpec((1, V_PAD), lambda b: (0, 0)),
        ],
        out_specs=(pl.BlockSpec((1, Lt, V_PAD), lambda b: (b, 0, 0)),
                   pl.BlockSpec((1, Lt, Ls), lambda b: (b, 0, 0))),
        scratch_shapes=[pltpu.VMEM((Lt + KERNEL_SIZE - 1, HID_DIM), jnp.float32)],
        compiler_params=pltpu.CompilerParams(
            dimension_semantics=("parallel",)),
    )(embedded, enc_conved, enc_combined,
      p['emb2hid_w'], p['emb2hid_b'],
      p['conv_wa'], p['conv_wg'], p['conv_ba'], p['conv_bg'],
      p['attn_hid2emb_w'], p['attn_hid2emb_b'],
      p['attn_emb2hid_w'], p['attn_emb2hid_b'],
      p['hid2emb_w'], p['hid2emb_b'],
      p['fc_out_w'], p['fc_out_b'])
    return logits[..., :OUTPUT_DIM], attn


@jax.jit
def seq2seq_forward(params, src, trg):
    enc_conved, enc_combined = encoder_forward(params['encoder'], src)
    output, attn = decoder_forward(params['decoder'], trg,
                                   enc_conved, enc_combined)
    return output, attn


if __name__ == "__main__":
    key = jax.random.PRNGKey(0)
    pkey, skey, tkey = jax.random.split(key, 3)
    params = init_params(pkey)

    B, SRC_LEN, TRG_LEN = 2, 8, 8
    src = jax.random.randint(skey, (B, SRC_LEN), 0, INPUT_DIM, dtype=jnp.int32)
    trg = jax.random.randint(tkey, (B, TRG_LEN), 0, OUTPUT_DIM, dtype=jnp.int32)

    output, attn = seq2seq_forward(params, src, trg)
    jax.block_until_ready((output, attn))

    assert output.shape == (B, TRG_LEN, OUTPUT_DIM)
    assert attn.shape == (B, TRG_LEN, SRC_LEN)
    assert bool(jnp.all(jnp.isfinite(output))) and bool(jnp.all(jnp.isfinite(attn)))
    print("KERNEL_OK")
</pallas_src>

<mosaic_0001>
module attributes {stable_mosaic.version = 11 : i64} {
  func.func @_encoder_kernel(%arg0: i32, %arg1: memref<1x8x32xf32, #tpu.memory_space<vmem>>, %arg2: memref<32x32xf32, #tpu.memory_space<vmem>>, %arg3: memref<1x32xf32, #tpu.memory_space<vmem>>, %arg4: memref<2x3x32x32xf32, #tpu.memory_space<vmem>>, %arg5: memref<2x3x32x32xf32, #tpu.memory_space<vmem>>, %arg6: memref<2x1x32xf32, #tpu.memory_space<vmem>>, %arg7: memref<2x1x32xf32, #tpu.memory_space<vmem>>, %arg8: memref<32x32xf32, #tpu.memory_space<vmem>>, %arg9: memref<1x32xf32, #tpu.memory_space<vmem>>, %arg10: memref<1x8x32xf32, #tpu.memory_space<vmem>>, %arg11: memref<1x8x32xf32, #tpu.memory_space<vmem>>, %arg12: memref<10x32xf32, #tpu.memory_space<vmem>>) attributes {dimension_semantics = [#tpu.dimension_semantics<parallel>], iteration_bounds = array<i64: 2>, scalar_prefetch = 0 : i64, scratch_operands = 1 : i64, tpu.core_type = #tpu.core_type<tc>, window_params = [{transform_indices = @transform_0, window_bounds = array<i64: 1, 8, 32>}, {pipeline_mode = #tpu.pipeline_mode<synchronous>, transform_indices = @transform_1, window_bounds = array<i64: 32, 32>}, {pipeline_mode = #tpu.pipeline_mode<synchronous>, transform_indices = @transform_2, window_bounds = array<i64: 1, 32>}, {pipeline_mode = #tpu.pipeline_mode<synchronous>, transform_indices = @transform_3, window_bounds = array<i64: 2, 3, 32, 32>}, {pipeline_mode = #tpu.pipeline_mode<synchronous>, transform_indices = @transform_4, window_bounds = array<i64: 2, 3, 32, 32>}, {pipeline_mode = #tpu.pipeline_mode<synchronous>, transform_indices = @transform_5, window_bounds = array<i64: 2, 1, 32>}, {pipeline_mode = #tpu.pipeline_mode<synchronous>, transform_indices = @transform_6, window_bounds = array<i64: 2, 1, 32>}, {pipeline_mode = #tpu.pipeline_mode<synchronous>, transform_indices = @transform_7, window_bounds = array<i64: 32, 32>}, {pipeline_mode = #tpu.pipeline_mode<synchronous>, transform_indices = @transform_8, window_bounds = array<i64: 1, 32>}, {transform_indices = @transform_9, window_bounds = array<i64: 1, 8, 32>}, {transform_indices = @transform_10, window_bounds = array<i64: 1, 8, 32>}]} {
    %c0 = arith.constant 0 : index
    %c0_0 = arith.constant 0 : index
    %c0_1 = arith.constant 0 : index
    %0 = vector.load %arg1[%c0, %c0_0, %c0_1] : memref<1x8x32xf32, #tpu.memory_space<vmem>>, vector<1x8x32xf32>
    %1 = vector.shape_cast %0 : vector<1x8x32xf32> to vector<8x32xf32>
    %c0_2 = arith.constant 0 : index
    %c0_3 = arith.constant 0 : index
    %2 = vector.load %arg2[%c0_2, %c0_3] : memref<32x32xf32, #tpu.memory_space<vmem>>, vector<32x32xf32>
    %cst = arith.constant dense<0.000000e+00> : vector<8x32xf32>
    %3 = tpu.matmul %1, %2, %cst {dimension_numbers = #tpu.dot_dimension_numbers<[1], [0], [0], [1], [0, 0, 1, 1], [], []>} : vector<8x32xf32>, vector<32x32xf32>, vector<8x32xf32> -> vector<8x32xf32>
    %c0_4 = arith.constant 0 : index
    %c0_5 = arith.constant 0 : index
    %4 = vector.load %arg3[%c0_4, %c0_5] : memref<1x32xf32, #tpu.memory_space<vmem>>, vector<1x32xf32>
    %5 = vector.broadcast %4 : vector<1x32xf32> to vector<8x32xf32>
    %6 = arith.addf %3, %5 : vector<8x32xf32>
    %c0_6 = arith.constant 0 : index
    %c0_7 = arith.constant 0 : index
    %c0_8 = arith.constant 0 : index
    %c0_9 = arith.constant 0 : index
    %7 = vector.load %arg4[%c0_6, %c0_7, %c0_8, %c0_9] : memref<2x3x32x32xf32, #tpu.memory_space<vmem>>, vector<1x3x32x32xf32>
    %8 = vector.shape_cast %7 : vector<1x3x32x32xf32> to vector<3x32x32xf32>
    %c0_10 = arith.constant 0 : index
    %c0_11 = arith.constant 0 : index
    %c0_12 = arith.constant 0 : index
    %c0_13 = arith.constant 0 : index
    %9 = vector.load %arg5[%c0_10, %c0_11, %c0_12, %c0_13] : memref<2x3x32x32xf32, #tpu.memory_space<vmem>>, vector<1x3x32x32xf32>
    %10 = vector.shape_cast %9 : vector<1x3x32x32xf32> to vector<3x32x32xf32>
    %cst_14 = arith.constant 0.000000e+00 : f32
    %11 = vector.broadcast %cst_14 : f32 to vector<10x32xf32>
    %c0_15 = arith.constant 0 : index
    %c0_16 = arith.constant 0 : index
    %12 = vector.load %arg12[%c0_15, %c0_16] : memref<10x32xf32, #tpu.memory_space<vmem>>, vector<10x32xf32>
    tpu.vector_store %arg12[%c0_15, %c0_16], %11 {strides = array<i32>} : memref<10x32xf32, #tpu.memory_space<vmem>>, vector<10x32xf32>,
    %c1 = arith.constant 1 : index
    %c0_17 = arith.constant 0 : index
    %13 = vector.load %arg12[%c1, %c0_17] : memref<10x32xf32, #tpu.memory_space<vmem>>, vector<8x32xf32>
    tpu.vector_store %arg12[%c1, %c0_17], %6 {strides = array<i32>} : memref<10x32xf32, #tpu.memory_space<vmem>>, vector<8x32xf32>,
    %cst_18 = arith.constant 0.000000e+00 : f32
    %14 = vector.broadcast %cst_18 : f32 to vector<8x32xf32>
    %cst_19 = arith.constant 0.000000e+00 : f32
    %15 = vector.broadcast %cst_19 : f32 to vector<8x32xf32>
    %c0_20 = arith.constant 0 : index
    %c0_21 = arith.constant 0 : index
    %16 = vector.load %arg12[%c0_20, %c0_21] : memref<10x32xf32, #tpu.memory_space<vmem>>, vector<8x32xf32>
    %17 = vector.extract_strided_slice %8 {offsets = [0, 0, 0], sizes = [1, 32, 32], strides = [1, 1, 1]} : vector<3x32x32xf32> to vector<1x32x32xf32>
    %18 = vector.shape_cast %17 : vector<1x32x32xf32> to vector<32x32xf32>
    %cst_22 = arith.constant dense<0.000000e+00> : vector<8x32xf32>
    %19 = tpu.matmul %16, %18, %cst_22 {dimension_numbers = #tpu.dot_dimension_numbers<[1], [0], [0], [1], [0, 0, 1, 1], [], []>} : vector<8x32xf32>, vector<32x32xf32>, vector<8x32xf32> -> vector<8x32xf32>
    %20 = arith.addf %14, %19 : vector<8x32xf32>
    %21 = vector.extract_strided_slice %10 {offsets = [0, 0, 0], sizes = [1, 32, 32], strides = [1, 1, 1]} : vector<3x32x32xf32> to vector<1x32x32xf32>
    %22 = vector.shape_cast %21 : vector<1x32x32xf32> to vector<32x32xf32>
    %cst_23 = arith.constant dense<0.000000e+00> : vector<8x32xf32>
    %23 = tpu.matmul %16, %22, %cst_23 {dimension_numbers = #tpu.dot_dimension_numbers<[1], [0], [0], [1], [0, 0, 1, 1], [], []>} : vector<8x32xf32>, vector<32x32xf32>, vector<8x32xf32> -> vector<8x32xf32>
    %24 = arith.addf %15, %23 : vector<8x32xf32>
    %c1_24 = arith.constant 1 : index
    %c0_25 = arith.constant 0 : index
    %25 = vector.load %arg12[%c1_24, %c0_25] : memref<10x32xf32, #tpu.memory_space<vmem>>, vector<8x32xf32>
    %26 = vector.extract_strided_slice %8 {offsets = [1, 0, 0], sizes = [1, 32, 32], strides = [1, 1, 1]} : vector<3x32x32xf32> to vector<1x32x32xf32>
    %27 = vector.shape_cast %26 : vector<1x32x32xf32> to vector<32x32xf32>
    %cst_26 = arith.constant dense<0.000000e+00> : vector<8x32xf32>
    %28 = tpu.matmul %25, %27, %cst_26 {dimension_numbers = #tpu.dot_dimension_numbers<[1], [0], [0], [1], [0, 0, 1, 1], [], []>} : vector<8x32xf32>, vector<32x32xf32>, vector<8x32xf32> -> vector<8x32xf32>
    %29 = arith.addf %20, %28 : vector<8x32xf32>
    %30 = vector.extract_strided_slice %10 {offsets = [1, 0, 0], sizes = [1, 32, 32], strides = [1, 1, 1]} : vector<3x32x32xf32> to vector<1x32x32xf32>
    %31 = vector.shape_cast %30 : vector<1x32x32xf32> to vector<32x32xf32>
    %cst_27 = arith.constant dense<0.000000e+00> : vector<8x32xf32>
    %32 = tpu.matmul %25, %31, %cst_27 {dimension_numbers = #tpu.dot_dimension_numbers<[1], [0], [0], [1], [0, 0, 1, 1], [], []>} : vector<8x32xf32>, vector<32x32xf32>, vector<8x32xf32> -> vector<8x32xf32>
    %33 = arith.addf %24, %32 : vector<8x32xf32>
    %c2 = arith.constant 2 : index
    %c0_28 = arith.constant 0 : index
    %34 = vector.load %arg12[%c2, %c0_28] : memref<10x32xf32, #tpu.memory_space<vmem>>, vector<8x32xf32>
    %35 = vector.extract_strided_slice %8 {offsets = [2, 0, 0], sizes = [1, 32, 32], strides = [1, 1, 1]} : vector<3x32x32xf32> to vector<1x32x32xf32>
    %36 = vector.shape_cast %35 : vector<1x32x32xf32> to vector<32x32xf32>
    %cst_29 = arith.constant dense<0.000000e+00> : vector<8x32xf32>
    %37 = tpu.matmul %34, %36, %cst_29 {dimension_numbers = #tpu.dot_dimension_numbers<[1], [0], [0], [1], [0, 0, 1, 1], [], []>} : vector<8x32xf32>, vector<32x32xf32>, vector<8x32xf32> -> vector<8x32xf32>
    %38 = arith.addf %29, %37 : vector<8x32xf32>
    %39 = vector.extract_strided_slice %10 {offsets = [2, 0, 0], sizes = [1, 32, 32], strides = [1, 1, 1]} : vector<3x32x32xf32> to vector<1x32x32xf32>
    %40 = vector.shape_cast %39 : vector<1x32x32xf32> to vector<32x32xf32>
    %cst_30 = arith.constant dense<0.000000e+00> : vector<8x32xf32>
    %41 = tpu.matmul %34, %40, %cst_30 {dimension_numbers = #tpu.dot_dimension_numbers<[1], [0], [0], [1], [0, 0, 1, 1], [], []>} : vector<8x32xf32>, vector<32x32xf32>, vector<8x32xf32> -> vector<8x32xf32>
    %42 = arith.addf %33, %41 : vector<8x32xf32>
    %c0_31 = arith.constant 0 : index
    %c0_32 = arith.constant 0 : index
    %c0_33 = arith.constant 0 : index
    %43 = vector.load %arg6[%c0_31, %c0_32, %c0_33] : memref<2x1x32xf32, #tpu.memory_space<vmem>>, vector<1x1x32xf32>
    %44 = vector.shape_cast %43 : vector<1x1x32xf32> to vector<1x32xf32>
    %45 = vector.broadcast %44 : vector<1x32xf32> to vector<8x32xf32>
    %46 = arith.addf %38, %45 : vector<8x32xf32>
    %c0_34 = arith.constant 0 : index
    %c0_35 = arith.constant 0 : index
    %c0_36 = arith.constant 0 : index
    %47 = vector.load %arg7[%c0_34, %c0_35, %c0_36] : memref<2x1x32xf32, #tpu.memory_space<vmem>>, vector<1x1x32xf32>
    %48 = vector.shape_cast %47 : vector<1x1x32xf32> to vector<1x32xf32>
    %49 = vector.broadcast %48 : vector<1x32xf32> to vector<8x32xf32>
    %50 = arith.addf %42, %49 : vector<8x32xf32>
    %51 = arith.negf %50 : vector<8x32xf32>
    %52 = math.exp %51 : vector<8x32xf32>
    %cst_37 = arith.constant 1.000000e+00 : f32
    %53 = vector.broadcast %cst_37 : f32 to vector<8x32xf32>
    %54 = arith.addf %53, %52 : vector<8x32xf32>
    %55 = arith.divf %53, %54 : vector<8x32xf32>
    %56 = arith.mulf %46, %55 : vector<8x32xf32>
    %57 = arith.addf %56, %6 : vector<8x32xf32>
    %cst_38 = arith.constant 0.707106769 : f32
    %58 = vector.broadcast %cst_38 : f32 to vector<8x32xf32>
    %59 = arith.mulf %57, %58 : vector<8x32xf32>
    %c1_39 = arith.constant 1 : index
    %c0_40 = arith.constant 0 : index
    %c0_41 = arith.constant 0 : index
    %c0_42 = arith.constant 0 : index
    %60 = vector.load %arg4[%c1_39, %c0_40, %c0_41, %c0_42] : memref<2x3x32x32xf32, #tpu.memory_space<vmem>>, vector<1x3x32x32xf32>
    %61 = vector.shape_cast %60 : vector<1x3x32x32xf32> to vector<3x32x32xf32>
    %c1_43 = arith.constant 1 : index
    %c0_44 = arith.constant 0 : index
    %c0_45 = arith.constant 0 : index
    %c0_46 = arith.constant 0 : index
    %62 = vector.load %arg5[%c1_43, %c0_44, %c0_45, %c0_46] : memref<2x3x32x32xf32, #tpu.memory_space<vmem>>, vector<1x3x32x32xf32>
    %63 = vector.shape_cast %62 : vector<1x3x32x32xf32> to vector<3x32x32xf32>
    %cst_47 = arith.constant 0.000000e+00 : f32
    %64 = vector.broadcast %cst_47 : f32 to vector<10x32xf32>
    %c0_48 = arith.constant 0 : index
    %c0_49 = arith.constant 0 : index
    %65 = vector.load %arg12[%c0_48, %c0_49] : memref<10x32xf32, #tpu.memory_space<vmem>>, vector<10x32xf32>
    tpu.vector_store %arg12[%c0_48, %c0_49], %64 {strides = array<i32>} : memref<10x32xf32, #tpu.memory_space<vmem>>, vector<10x32xf32>,
    %c1_50 = arith.constant 1 : index
    %c0_51 = arith.constant 0 : index
    %66 = vector.load %arg12[%c1_50, %c0_51] : memref<10x32xf32, #tpu.memory_space<vmem>>, vector<8x32xf32>
    tpu.vector_store %arg12[%c1_50, %c0_51], %59 {strides = array<i32>} : memref<10x32xf32, #tpu.memory_space<vmem>>, vector<8x32xf32>,
    %cst_52 = arith.constant 0.000000e+00 : f32
    %67 = vector.broadcast %cst_52 : f32 to vector<8x32xf32>
    %cst_53 = arith.constant 0.000000e+00 : f32
    %68 = vector.broadcast %cst_53 : f32 to vector<8x32xf32>
    %c0_54 = arith.constant 0 : index
    %c0_55 = arith.constant 0 : index
    %69 = vector.load %arg12[%c0_54, %c0_55] : memref<10x32xf32, #tpu.memory_space<vmem>>, vector<8x32xf32>
    %70 = vector.extract_strided_slice %61 {offsets = [0, 0, 0], sizes = [1, 32, 32], strides = [1, 1, 1]} : vector<3x32x32xf32> to vector<1x32x32xf32>
    %71 = vector.shape_cast %70 : vector<1x32x32xf32> to vector<32x32xf32>
    %cst_56 = arith.constant dense<0.000000e+00> : vector<8x32xf32>
    %72 = tpu.matmul %69, %71, %cst_56 {dimension_numbers = #tpu.dot_dimension_numbers<[1], [0], [0], [1], [0, 0, 1, 1], [], []>} : vector<8x32xf32>, vector<32x32xf32>, vector<8x32xf32> -> vector<8x32xf32>
    %73 = arith.addf %67, %72 : vector<8x32xf32>
    %74 = vector.extract_strided_slice %63 {offsets = [0, 0, 0], sizes = [1, 32, 32], strides = [1, 1, 1]} : vector<3x32x32xf32> to vector<1x32x32xf32>
    %75 = vector.shape_cast %74 : vector<1x32x32xf32> to vector<32x32xf32>
    %cst_57 = arith.constant dense<0.000000e+00> : vector<8x32xf32>
    %76 = tpu.matmul %69, %75, %cst_57 {dimension_numbers = #tpu.dot_dimension_numbers<[1], [0], [0], [1], [0, 0, 1, 1], [], []>} : vector<8x32xf32>, vector<32x32xf32>, vector<8x32xf32> -> vector<8x32xf32>
    %77 = arith.addf %68, %76 : vector<8x32xf32>
    %c1_58 = arith.constant 1 : index
    %c0_59 = arith.constant 0 : index
    %78 = vector.load %arg12[%c1_58, %c0_59] : memref<10x32xf32, #tpu.memory_space<vmem>>, vector<8x32xf32>
    %79 = vector.extract_strided_slice %61 {offsets = [1, 0, 0], sizes = [1, 32, 32], strides = [1, 1, 1]} : vector<3x32x32xf32> to vector<1x32x32xf32>
    %80 = vector.shape_cast %79 : vector<1x32x32xf32> to vector<32x32xf32>
    %cst_60 = arith.constant dense<0.000000e+00> : vector<8x32xf32>
    %81 = tpu.matmul %78, %80, %cst_60 {dimension_numbers = #tpu.dot_dimension_numbers<[1], [0], [0], [1], [0, 0, 1, 1], [], []>} : vector<8x32xf32>, vector<32x32xf32>, vector<8x32xf32> -> vector<8x32xf32>
    %82 = arith.addf %73, %81 : vector<8x32xf32>
    %83 = vector.extract_strided_slice %63 {offsets = [1, 0, 0], sizes = [1, 32, 32], strides = [1, 1, 1]} : vector<3x32x32xf32> to vector<1x32x32xf32>
    %84 = vector.shape_cast %83 : vector<1x32x32xf32> to vector<32x32xf32>
    %cst_61 = arith.constant dense<0.000000e+00> : vector<8x32xf32>
    %85 = tpu.matmul %78, %84, %cst_61 {dimension_numbers = #tpu.dot_dimension_numbers<[1], [0], [0], [1], [0, 0, 1, 1], [], []>} : vector<8x32xf32>, vector<32x32xf32>, vector<8x32xf32> -> vector<8x32xf32>
    %86 = arith.addf %77, %85 : vector<8x32xf32>
    %c2_62 = arith.constant 2 : index
    %c0_63 = arith.constant 0 : index
    %87 = vector.load %arg12[%c2_62, %c0_63] : memref<10x32xf32, #tpu.memory_space<vmem>>, vector<8x32xf32>
    %88 = vector.extract_strided_slice %61 {offsets = [2, 0, 0], sizes = [1, 32, 32], strides = [1, 1, 1]} : vector<3x32x32xf32> to vector<1x32x32xf32>
    %89 = vector.shape_cast %88 : vector<1x32x32xf32> to vector<32x32xf32>
    %cst_64 = arith.constant dense<0.000000e+00> : vector<8x32xf32>
    %90 = tpu.matmul %87, %89, %cst_64 {dimension_numbers = #tpu.dot_dimension_numbers<[1], [0], [0], [1], [0, 0, 1, 1], [], []>} : vector<8x32xf32>, vector<32x32xf32>, vector<8x32xf32> -> vector<8x32xf32>
    %91 = arith.addf %82, %90 : vector<8x32xf32>
    %92 = vector.extract_strided_slice %63 {offsets = [2, 0, 0], sizes = [1, 32, 32], strides = [1, 1, 1]} : vector<3x32x32xf32> to vector<1x32x32xf32>
    %93 = vector.shape_cast %92 : vector<1x32x32xf32> to vector<32x32xf32>
    %cst_65 = arith.constant dense<0.000000e+00> : vector<8x32xf32>
    %94 = tpu.matmul %87, %93, %cst_65 {dimension_numbers = #tpu.dot_dimension_numbers<[1], [0], [0], [1], [0, 0, 1, 1], [], []>} : vector<8x32xf32>, vector<32x32xf32>, vector<8x32xf32> -> vector<8x32xf32>
    %95 = arith.addf %86, %94 : vector<8x32xf32>
    %c1_66 = arith.constant 1 : index
    %c0_67 = arith.constant 0 : index
    %c0_68 = arith.constant 0 : index
    %96 = vector.load %arg6[%c1_66, %c0_67, %c0_68] : memref<2x1x32xf32, #tpu.memory_space<vmem>>, vector<1x1x32xf32>
    %97 = vector.shape_cast %96 : vector<1x1x32xf32> to vector<1x32xf32>
    %98 = vector.broadcast %97 : vector<1x32xf32> to vector<8x32xf32>
    %99 = arith.addf %91, %98 : vector<8x32xf32>
    %c1_69 = arith.constant 1 : index
    %c0_70 = arith.constant 0 : index
    %c0_71 = arith.constant 0 : index
    %100 = vector.load %arg7[%c1_69, %c0_70, %c0_71] : memref<2x1x32xf32, #tpu.memory_space<vmem>>, vector<1x1x32xf32>
    %101 = vector.shape_cast %100 : vector<1x1x32xf32> to vector<1x32xf32>
    %102 = vector.broadcast %101 : vector<1x32xf32> to vector<8x32xf32>
    %103 = arith.addf %95, %102 : vector<8x32xf32>
    %104 = arith.negf %103 : vector<8x32xf32>
    %105 = math.exp %104 : vector<8x32xf32>
    %cst_72 = arith.constant 1.000000e+00 : f32
    %106 = vector.broadcast %cst_72 : f32 to vector<8x32xf32>
    %107 = arith.addf %106, %105 : vector<8x32xf32>
    %108 = arith.divf %106, %107 : vector<8x32xf32>
    %109 = arith.mulf %99, %108 : vector<8x32xf32>
    %110 = arith.addf %109, %59 : vector<8x32xf32>
    %cst_73 = arith.constant 0.707106769 : f32
    %111 = vector.broadcast %cst_73 : f32 to vector<8x32xf32>
    %112 = arith.mulf %110, %111 : vector<8x32xf32>
    %c0_74 = arith.constant 0 : index
    %c0_75 = arith.constant 0 : index
    %113 = vector.load %arg8[%c0_74, %c0_75] : memref<32x32xf32, #tpu.memory_space<vmem>>, vector<32x32xf32>
    %cst_76 = arith.constant dense<0.000000e+00> : vector<8x32xf32>
    %114 = tpu.matmul %112, %113, %cst_76 {dimension_numbers = #tpu.dot_dimension_numbers<[1], [0], [0], [1], [0, 0, 1, 1], [], []>} : vector<8x32xf32>, vector<32x32xf32>, vector<8x32xf32> -> vector<8x32xf32>
    %c0_77 = arith.constant 0 : index
    %c0_78 = arith.constant 0 : index
    %115 = vector.load %arg9[%c0_77, %c0_78] : memref<1x32xf32, #tpu.memory_space<vmem>>, vector<1x32xf32>
    %116 = vector.broadcast %115 : vector<1x32xf32> to vector<8x32xf32>
    %117 = arith.addf %114, %116 : vector<8x32xf32>
    %c0_79 = arith.constant 0 : index
    %c0_80 = arith.constant 0 : index
    %c0_81 = arith.constant 0 : index
    %118 = vector.load %arg10[%c0_79, %c0_80, %c0_81] : memref<1x8x32xf32, #tpu.memory_space<vmem>>, vector<1x8x32xf32>
    %119 = vector.shape_cast %118 : vector<1x8x32xf32> to vector<8x32xf32>
    %120 = vector.shape_cast %117 : vector<8x32xf32> to vector<1x8x32xf32>
    tpu.vector_store %arg10[%c0_79, %c0_80, %c0_81], %120 {strides = array<i32>} : memref<1x8x32xf32, #tpu.memory_space<vmem>>, vector<1x8x32xf32>,
    %121 = arith.addf %117, %1 : vector<8x32xf32>
    %cst_82 = arith.constant 0.707106769 : f32
    %122 = vector.broadcast %cst_82 : f32 to vector<8x32xf32>
    %123 = arith.mulf %121, %122 : vector<8x32xf32>
    %c0_83 = arith.constant 0 : index
    %c0_84 = arith.constant 0 : index
    %c0_85 = arith.constant 0 : index
    %124 = vector.load %arg11[%c0_83, %c0_84, %c0_85] : memref<1x8x32xf32, #tpu.memory_space<vmem>>, vector<1x8x32xf32>
    %125 = vector.shape_cast %124 : vector<1x8x32xf32> to vector<8x32xf32>
    %126 = vector.shape_cast %123 : vector<8x32xf32> to vector<1x8x32xf32>
    tpu.vector_store %arg11[%c0_83, %c0_84, %c0_85], %126 {strides = array<i32>} : memref<1x8x32xf32, #tpu.memory_space<vmem>>, vector<1x8x32xf32>,
    return
  }
  func.func @transform_0(%arg0: i32) -> (i32, i32, i32) {
    %c0_i32 = arith.constant 0 : i32
    %c0_i32_0 = arith.constant 0 : i32
    %c0_i32_1 = arith.constant 0 : i32
    return %arg0, %c0_i32, %c0_i32_0 : i32, i32, i32
  }
  func.func @transform_1(%arg0: i32) -> (i32, i32) {
    %c0_i32 = arith.constant 0 : i32
    %c0_i32_0 = arith.constant 0 : i32
    %c0_i32_1 = arith.constant 0 : i32
    return %c0_i32, %c0_i32_0 : i32, i32
  }
  func.func @transform_2(%arg0: i32) -> (i32, i32) {
    %c0_i32 = arith.constant 0 : i32
    %c0_i32_0 = arith.constant 0 : i32
    %c0_i32_1 = arith.constant 0 : i32
    return %c0_i32, %c0_i32_0 : i32, i32
  }
  func.func @transform_3(%arg0: i32) -> (i32, i32, i32, i32) {
    %c0_i32 = arith.constant 0 : i32
    %c0_i32_0 = arith.constant 0 : i32
    %c0_i32_1 = arith.constant 0 : i32
    %c0_i32_2 = arith.constant 0 : i32
    %c0_i32_3 = arith.constant 0 : i32
    return %c0_i32, %c0_i32_0, %c0_i32_1, %c0_i32_2 : i32, i32, i32, i32
  }
  func.func @transform_4(%arg0: i32) -> (i32, i32, i32, i32) {
    %c0_i32 = arith.constant 0 : i32
    %c0_i32_0 = arith.constant 0 : i32
    %c0_i32_1 = arith.constant 0 : i32
    %c0_i32_2 = arith.constant 0 : i32
    %c0_i32_3 = arith.constant 0 : i32
    return %c0_i32, %c0_i32_0, %c0_i32_1, %c0_i32_2 : i32, i32, i32, i32
  }
  func.func @transform_5(%arg0: i32) -> (i32, i32, i32) {
    %c0_i32 = arith.constant 0 : i32
    %c0_i32_0 = arith.constant 0 : i32
    %c0_i32_1 = arith.constant 0 : i32
    %c0_i32_2 = arith.constant 0 : i32
    return %c0_i32, %c0_i32_0, %c0_i32_1 : i32, i32, i32
  }
  func.func @transform_6(%arg0: i32) -> (i32, i32, i32) {
    %c0_i32 = arith.constant 0 : i32
    %c0_i32_0 = arith.constant 0 : i32
    %c0_i32_1 = arith.constant 0 : i32
    %c0_i32_2 = arith.constant 0 : i32
    return %c0_i32, %c0_i32_0, %c0_i32_1 : i32, i32, i32
  }
  func.func @transform_7(%arg0: i32) -> (i32, i32) {
    %c0_i32 = arith.constant 0 : i32
    %c0_i32_0 = arith.constant 0 : i32
    %c0_i32_1 = arith.constant 0 : i32
    return %c0_i32, %c0_i32_0 : i32, i32
  }
  func.func @transform_8(%arg0: i32) -> (i32, i32) {
    %c0_i32 = arith.constant 0 : i32
    %c0_i32_0 = arith.constant 0 : i32
    %c0_i32_1 = arith.constant 0 : i32
    return %c0_i32, %c0_i32_0 : i32, i32
  }
  func.func @transform_9(%arg0: i32) -> (i32, i32, i32) {
    %c0_i32 = arith.constant 0 : i32
    %c0_i32_0 = arith.constant 0 : i32
    %c0_i32_1 = arith.constant 0 : i32
    return %arg0, %c0_i32, %c0_i32_0 : i32, i32, i32
  }
  func.func @transform_10(%arg0: i32) -> (i32, i32, i32) {
    %c0_i32 = arith.constant 0 : i32
    %c0_i32_0 = arith.constant 0 : i32
    %c0_i32_1 = arith.constant 0 : i32
    return %arg0, %c0_i32, %c0_i32_0 : i32, i32, i32
  }
}

module attributes {stable_mosaic.version = 11 : i64} {
  func.func @_decoder_kernel(%arg0: i32, %arg1: memref<1x8x32xf32, #tpu.memory_space<vmem>>, %arg2: memref<1x8x32xf32, #tpu.memory_space<vmem>>, %arg3: memref<1x8x32xf32, #tpu.memory_space<vmem>>, %arg4: memref<32x32xf32, #tpu.memory_space<vmem>>, %arg5: memref<1x32xf32, #tpu.memory_space<vmem>>, %arg6: memref<2x3x32x32xf32, #tpu.memory_space<vmem>>, %arg7: memref<2x3x32x32xf32, #tpu.memory_space<vmem>>, %arg8: memref<2x1x32xf32, #tpu.memory_space<vmem>>, %arg9: memref<2x1x32xf32, #tpu.memory_space<vmem>>, %arg10: memref<32x32xf32, #tpu.memory_space<vmem>>, %arg11: memref<1x32xf32, #tpu.memory_space<vmem>>, %arg12: memref<32x32xf32, #tpu.memory_space<vmem>>, %arg13: memref<1x32xf32, #tpu.memory_space<vmem>>, %arg14: memref<32x32xf32, #tpu.memory_space<vmem>>, %arg15: memref<1x32xf32, #tpu.memory_space<vmem>>, %arg16: memref<32x128xf32, #tpu.memory_space<vmem>>, %arg17: memref<1x128xf32, #tpu.memory_space<vmem>>, %arg18: memref<1x8x128xf32, #tpu.memory_space<vmem>>, %arg19: memref<1x8x8xf32, #tpu.memory_space<vmem>>, %arg20: memref<10x32xf32, #tpu.memory_space<vmem>>) attributes {dimension_semantics = [#tpu.dimension_semantics<parallel>], iteration_bounds = array<i64: 2>, scalar_prefetch = 0 : i64, scratch_operands = 1 : i64, tpu.core_type = #tpu.core_type<tc>, window_params = [{transform_indices = @transform_0, window_bounds = array<i64: 1, 8, 32>}, {transform_indices = @transform_1, window_bounds = array<i64: 1, 8, 32>}, {transform_indices = @transform_2, window_bounds = array<i64: 1, 8, 32>}, {pipeline_mode = #tpu.pipeline_mode<synchronous>, transform_indices = @transform_3, window_bounds = array<i64: 32, 32>}, {pipeline_mode = #tpu.pipeline_mode<synchronous>, transform_indices = @transform_4, window_bounds = array<i64: 1, 32>}, {pipeline_mode = #tpu.pipeline_mode<synchronous>, transform_indices = @transform_5, window_bounds = array<i64: 2, 3, 32, 32>}, {pipeline_mode = #tpu.pipeline_mode<synchronous>, transform_indices = @transform_6, window_bounds = array<i64: 2, 3, 32, 32>}, {pipeline_mode = #tpu.pipeline_mode<synchronous>, transform_indices = @transform_7, window_bounds = array<i64: 2, 1, 32>}, {pipeline_mode = #tpu.pipeline_mode<synchronous>, transform_indices = @transform_8, window_bounds = array<i64: 2, 1, 32>}, {pipeline_mode = #tpu.pipeline_mode<synchronous>, transform_indices = @transform_9, window_bounds = array<i64: 32, 32>}, {pipeline_mode = #tpu.pipeline_mode<synchronous>, transform_indices = @transform_10, window_bounds = array<i64: 1, 32>}, {pipeline_mode = #tpu.pipeline_mode<synchronous>, transform_indices = @transform_11, window_bounds = array<i64: 32, 32>}, {pipeline_mode = #tpu.pipeline_mode<synchronous>, transform_indices = @transform_12, window_bounds = array<i64: 1, 32>}, {pipeline_mode = #tpu.pipeline_mode<synchronous>, transform_indices = @transform_13, window_bounds = array<i64: 32, 32>}, {pipeline_mode = #tpu.pipeline_mode<synchronous>, transform_indices = @transform_14, window_bounds = array<i64: 1, 32>}, {pipeline_mode = #tpu.pipeline_mode<synchronous>, transform_indices = @transform_15, window_bounds = array<i64: 32, 128>}, {pipeline_mode = #tpu.pipeline_mode<synchronous>, transform_indices = @transform_16, window_bounds = array<i64: 1, 128>}, {transform_indices = @transform_17, window_bounds = array<i64: 1, 8, 128>}, {transform_indices = @transform_18, window_bounds = array<i64: 1, 8, 8>}]} {
    %c0 = arith.constant 0 : index
    %c0_0 = arith.constant 0 : index
    %c0_1 = arith.constant 0 : index
    %0 = vector.load %arg1[%c0, %c0_0, %c0_1] : memref<1x8x32xf32, #tpu.memory_space<vmem>>, vector<1x8x32xf32>
    %1 = vector.shape_cast %0 : vector<1x8x32xf32> to vector<8x32xf32>
    %c0_2 = arith.constant 0 : index
    %c0_3 = arith.constant 0 : index
    %c0_4 = arith.constant 0 : index
    %2 = vector.load %arg2[%c0_2, %c0_3, %c0_4] : memref<1x8x32xf32, #tpu.memory_space<vmem>>, vector<1x8x32xf32>
    %3 = vector.shape_cast %2 : vector<1x8x32xf32> to vector<8x32xf32>
    %c0_5 = arith.constant 0 : index
    %c0_6 = arith.constant 0 : index
    %c0_7 = arith.constant 0 : index
    %4 = vector.load %arg3[%c0_5, %c0_6, %c0_7] : memref<1x8x32xf32, #tpu.memory_space<vmem>>, vector<1x8x32xf32>
    %5 = vector.shape_cast %4 : vector<1x8x32xf32> to vector<8x32xf32>
    %c0_8 = arith.constant 0 : index
    %c0_9 = arith.constant 0 : index
    %6 = vector.load %arg4[%c0_8, %c0_9] : memref<32x32xf32, #tpu.memory_space<vmem>>, vector<32x32xf32>
    %cst = arith.constant dense<0.000000e+00> : vector<8x32xf32>
    %7 = tpu.matmul %1, %6, %cst {dimension_numbers = #tpu.dot_dimension_numbers<[1], [0], [0], [1], [0, 0, 1, 1], [], []>} : vector<8x32xf32>, vector<32x32xf32>, vector<8x32xf32> -> vector<8x32xf32>
    %c0_10 = arith.constant 0 : index
    %c0_11 = arith.constant 0 : index
    %8 = vector.load %arg5[%c0_10, %c0_11] : memref<1x32xf32, #tpu.memory_space<vmem>>, vector<1x32xf32>
    %9 = vector.broadcast %8 : vector<1x32xf32> to vector<8x32xf32>
    %10 = arith.addf %7, %9 : vector<8x32xf32>
    %c0_12 = arith.constant 0 : index
    %c0_13 = arith.constant 0 : index
    %c0_14 = arith.constant 0 : index
    %c0_15 = arith.constant 0 : index
    %11 = vector.load %arg6[%c0_12, %c0_13, %c0_14, %c0_15] : memref<2x3x32x32xf32, #tpu.memory_space<vmem>>, vector<1x3x32x32xf32>
    %12 = vector.shape_cast %11 : vector<1x3x32x32xf32> to vector<3x32x32xf32>
    %c0_16 = arith.constant 0 : index
    %c0_17 = arith.constant 0 : index
    %c0_18 = arith.constant 0 : index
    %c0_19 = arith.constant 0 : index
    %13 = vector.load %arg7[%c0_16, %c0_17, %c0_18, %c0_19] : memref<2x3x32x32xf32, #tpu.memory_space<vmem>>, vector<1x3x32x32xf32>
    %14 = vector.shape_cast %13 : vector<1x3x32x32xf32> to vector<3x32x32xf32>
    %cst_20 = arith.constant 1.000000e+00 : f32
    %15 = vector.broadcast %cst_20 : f32 to vector<10x32xf32>
    %c0_21 = arith.constant 0 : index
    %c0_22 = arith.constant 0 : index
    %16 = vector.load %arg20[%c0_21, %c0_22] : memref<10x32xf32, #tpu.memory_space<vmem>>, vector<10x32xf32>
    tpu.vector_store %arg20[%c0_21, %c0_22], %15 {strides = array<i32>} : memref<10x32xf32, #tpu.memory_space<vmem>>, vector<10x32xf32>,
    %c2 = arith.constant 2 : index
    %c0_23 = arith.constant 0 : index
    %17 = vector.load %arg20[%c2, %c0_23] : memref<10x32xf32, #tpu.memory_space<vmem>>, vector<8x32xf32>
    tpu.vector_store %arg20[%c2, %c0_23], %10 {strides = array<i32>} : memref<10x32xf32, #tpu.memory_space<vmem>>, vector<8x32xf32>,
    %cst_24 = arith.constant 0.000000e+00 : f32
    %18 = vector.broadcast %cst_24 : f32 to vector<8x32xf32>
    %cst_25 = arith.constant 0.000000e+00 : f32
    %19 = vector.broadcast %cst_25 : f32 to vector<8x32xf32>
    %c0_26 = arith.constant 0 : index
    %c0_27 = arith.constant 0 : index
    %20 = vector.load %arg20[%c0_26, %c0_27] : memref<10x32xf32, #tpu.memory_space<vmem>>, vector<8x32xf32>
    %21 = vector.extract_strided_slice %12 {offsets = [0, 0, 0], sizes = [1, 32, 32], strides = [1, 1, 1]} : vector<3x32x32xf32> to vector<1x32x32xf32>
    %22 = vector.shape_cast %21 : vector<1x32x32xf32> to vector<32x32xf32>
    %cst_28 = arith.constant dense<0.000000e+00> : vector<8x32xf32>
    %23 = tpu.matmul %20, %22, %cst_28 {dimension_numbers = #tpu.dot_dimension_numbers<[1], [0], [0], [1], [0, 0, 1, 1], [], []>} : vector<8x32xf32>, vector<32x32xf32>, vector<8x32xf32> -> vector<8x32xf32>
    %24 = arith.addf %18, %23 : vector<8x32xf32>
    %25 = vector.extract_strided_slice %14 {offsets = [0, 0, 0], sizes = [1, 32, 32], strides = [1, 1, 1]} : vector<3x32x32xf32> to vector<1x32x32xf32>
    %26 = vector.shape_cast %25 : vector<1x32x32xf32> to vector<32x32xf32>
    %cst_29 = arith.constant dense<0.000000e+00> : vector<8x32xf32>
    %27 = tpu.matmul %20, %26, %cst_29 {dimension_numbers = #tpu.dot_dimension_numbers<[1], [0], [0], [1], [0, 0, 1, 1], [], []>} : vector<8x32xf32>, vector<32x32xf32>, vector<8x32xf32> -> vector<8x32xf32>
    %28 = arith.addf %19, %27 : vector<8x32xf32>
    %c1 = arith.constant 1 : index
    %c0_30 = arith.constant 0 : index
    %29 = vector.load %arg20[%c1, %c0_30] : memref<10x32xf32, #tpu.memory_space<vmem>>, vector<8x32xf32>
    %30 = vector.extract_strided_slice %12 {offsets = [1, 0, 0], sizes = [1, 32, 32], strides = [1, 1, 1]} : vector<3x32x32xf32> to vector<1x32x32xf32>
    %31 = vector.shape_cast %30 : vector<1x32x32xf32> to vector<32x32xf32>
    %cst_31 = arith.constant dense<0.000000e+00> : vector<8x32xf32>
    %32 = tpu.matmul %29, %31, %cst_31 {dimension_numbers = #tpu.dot_dimension_numbers<[1], [0], [0], [1], [0, 0, 1, 1], [], []>} : vector<8x32xf32>, vector<32x32xf32>, vector<8x32xf32> -> vector<8x32xf32>
    %33 = arith.addf %24, %32 : vector<8x32xf32>
    %34 = vector.extract_strided_slice %14 {offsets = [1, 0, 0], sizes = [1, 32, 32], strides = [1, 1, 1]} : vector<3x32x32xf32> to vector<1x32x32xf32>
    %35 = vector.shape_cast %34 : vector<1x32x32xf32> to vector<32x32xf32>
    %cst_32 = arith.constant dense<0.000000e+00> : vector<8x32xf32>
    %36 = tpu.matmul %29, %35, %cst_32 {dimension_numbers = #tpu.dot_dimension_numbers<[1], [0], [0], [1], [0, 0, 1, 1], [], []>} : vector<8x32xf32>, vector<32x32xf32>, vector<8x32xf32> -> vector<8x32xf32>
    %37 = arith.addf %28, %36 : vector<8x32xf32>
    %c2_33 = arith.constant 2 : index
    %c0_34 = arith.constant 0 : index
    %38 = vector.load %arg20[%c2_33, %c0_34] : memref<10x32xf32, #tpu.memory_space<vmem>>, vector<8x32xf32>
    %39 = vector.extract_strided_slice %12 {offsets = [2, 0, 0], sizes = [1, 32, 32], strides = [1, 1, 1]} : vector<3x32x32xf32> to vector<1x32x32xf32>
    %40 = vector.shape_cast %39 : vector<1x32x32xf32> to vector<32x32xf32>
    %cst_35 = arith.constant dense<0.000000e+00> : vector<8x32xf32>
    %41 = tpu.matmul %38, %40, %cst_35 {dimension_numbers = #tpu.dot_dimension_numbers<[1], [0], [0], [1], [0, 0, 1, 1], [], []>} : vector<8x32xf32>, vector<32x32xf32>, vector<8x32xf32> -> vector<8x32xf32>
    %42 = arith.addf %33, %41 : vector<8x32xf32>
    %43 = vector.extract_strided_slice %14 {offsets = [2, 0, 0], sizes = [1, 32, 32], strides = [1, 1, 1]} : vector<3x32x32xf32> to vector<1x32x32xf32>
    %44 = vector.shape_cast %43 : vector<1x32x32xf32> to vector<32x32xf32>
    %cst_36 = arith.constant dense<0.000000e+00> : vector<8x32xf32>
    %45 = tpu.matmul %38, %44, %cst_36 {dimension_numbers = #tpu.dot_dimension_numbers<[1], [0], [0], [1], [0, 0, 1, 1], [], []>} : vector<8x32xf32>, vector<32x32xf32>, vector<8x32xf32> -> vector<8x32xf32>
    %46 = arith.addf %37, %45 : vector<8x32xf32>
    %c0_37 = arith.constant 0 : index
    %c0_38 = arith.constant 0 : index
    %c0_39 = arith.constant 0 : index
    %47 = vector.load %arg8[%c0_37, %c0_38, %c0_39] : memref<2x1x32xf32, #tpu.memory_space<vmem>>, vector<1x1x32xf32>
    %48 = vector.shape_cast %47 : vector<1x1x32xf32> to vector<1x32xf32>
    %49 = vector.broadcast %48 : vector<1x32xf32> to vector<8x32xf32>
    %50 = arith.addf %42, %49 : vector<8x32xf32>
    %c0_40 = arith.constant 0 : index
    %c0_41 = arith.constant 0 : index
    %c0_42 = arith.constant 0 : index
    %51 = vector.load %arg9[%c0_40, %c0_41, %c0_42] : memref<2x1x32xf32, #tpu.memory_space<vmem>>, vector<1x1x32xf32>
    %52 = vector.shape_cast %51 : vector<1x1x32xf32> to vector<1x32xf32>
    %53 = vector.broadcast %52 : vector<1x32xf32> to vector<8x32xf32>
    %54 = arith.addf %46, %53 : vector<8x32xf32>
    %55 = arith.negf %54 : vector<8x32xf32>
    %56 = math.exp %55 : vector<8x32xf32>
    %cst_43 = arith.constant 1.000000e+00 : f32
    %57 = vector.broadcast %cst_43 : f32 to vector<8x32xf32>
    %58 = arith.addf %57, %56 : vector<8x32xf32>
    %59 = arith.divf %57, %58 : vector<8x32xf32>
    %60 = arith.mulf %50, %59 : vector<8x32xf32>
    %c0_44 = arith.constant 0 : index
    %c0_45 = arith.constant 0 : index
    %61 = vector.load %arg10[%c0_44, %c0_45] : memref<32x32xf32, #tpu.memory_space<vmem>>, vector<32x32xf32>
    %cst_46 = arith.constant dense<0.000000e+00> : vector<8x32xf32>
    %62 = tpu.matmul %60, %61, %cst_46 {dimension_numbers = #tpu.dot_dimension_numbers<[1], [0], [0], [1], [0, 0, 1, 1], [], []>} : vector<8x32xf32>, vector<32x32xf32>, vector<8x32xf32> -> vector<8x32xf32>
    %c0_47 = arith.constant 0 : index
    %c0_48 = arith.constant 0 : index
    %63 = vector.load %arg11[%c0_47, %c0_48] : memref<1x32xf32, #tpu.memory_space<vmem>>, vector<1x32xf32>
    %64 = vector.broadcast %63 : vector<1x32xf32> to vector<8x32xf32>
    %65 = arith.addf %62, %64 : vector<8x32xf32>
    %66 = arith.addf %65, %1 : vector<8x32xf32>
    %cst_49 = arith.constant 0.707106769 : f32
    %67 = vector.broadcast %cst_49 : f32 to vector<8x32xf32>
    %68 = arith.mulf %66, %67 : vector<8x32xf32>
    %cst_50 = arith.constant dense<0.000000e+00> : vector<8x8xf32>
    %69 = tpu.matmul %68, %3, %cst_50 {dimension_numbers = #tpu.dot_dimension_numbers<[1], [1], [0], [0], [0, 0, 1, 0], [], []>} : vector<8x32xf32>, vector<8x32xf32>, vector<8x8xf32> -> vector<8x8xf32>
    %cst_51 = arith.constant dense<0xFF800000> : vector<8xf32>
    %70 = vector.multi_reduction <maximumf>, %69, %cst_51 [1] : vector<8x8xf32> to vector<8xf32>
    %71 = vector.shape_cast %70 : vector<8xf32> to vector<8x1xf32>
    %72 = vector.broadcast %71 : vector<8x1xf32> to vector<8x8xf32>
    %73 = arith.subf %69, %72 : vector<8x8xf32>
    %74 = math.exp %73 : vector<8x8xf32>
    %cst_52 = arith.constant dense<0.000000e+00> : vector<8xf32>
    %75 = vector.multi_reduction <add>, %74, %cst_52 [1] : vector<8x8xf32> to vector<8xf32>
    %76 = vector.shape_cast %75 : vector<8xf32> to vector<8x1xf32>
    %77 = tpu.reciprocal %76 {approx = true} : vector<8x1xf32> -> vector<8x1xf32>
    %78 = vector.broadcast %77 : vector<8x1xf32> to vector<8x8xf32>
    %79 = arith.mulf %74, %78 : vector<8x8xf32>
    %cst_53 = arith.constant dense<0.000000e+00> : vector<8x32xf32>
    %80 = tpu.matmul %79, %5, %cst_53 {dimension_numbers = #tpu.dot_dimension_numbers<[1], [0], [0], [1], [0, 0, 1, 1], [], []>} : vector<8x8xf32>, vector<8x32xf32>, vector<8x32xf32> -> vector<8x32xf32>
    %c0_54 = arith.constant 0 : index
    %c0_55 = arith.constant 0 : index
    %81 = vector.load %arg12[%c0_54, %c0_55] : memref<32x32xf32, #tpu.memory_space<vmem>>, vector<32x32xf32>
    %cst_56 = arith.constant dense<0.000000e+00> : vector<8x32xf32>
    %82 = tpu.matmul %80, %81, %cst_56 {dimension_numbers = #tpu.dot_dimension_numbers<[1], [0], [0], [1], [0, 0, 1, 1], [], []>} : vector<8x32xf32>, vector<32x32xf32>, vector<8x32xf32> -> vector<8x32xf32>
    %c0_57 = arith.constant 0 : index
    %c0_58 = arith.constant 0 : index
    %83 = vector.load %arg13[%c0_57, %c0_58] : memref<1x32xf32, #tpu.memory_space<vmem>>, vector<1x32xf32>
    %84 = vector.broadcast %83 : vector<1x32xf32> to vector<8x32xf32>
    %85 = arith.addf %82, %84 : vector<8x32xf32>
    %86 = arith.addf %60, %85 : vector<8x32xf32>
    %cst_59 = arith.constant 0.707106769 : f32
    %87 = vector.broadcast %cst_59 : f32 to vector<8x32xf32>
    %88 = arith.mulf %86, %87 : vector<8x32xf32>
    %89 = arith.addf %88, %10 : vector<8x32xf32>
    %cst_60 = arith.constant 0.707106769 : f32
    %90 = vector.broadcast %cst_60 : f32 to vector<8x32xf32>
    %91 = arith.mulf %89, %90 : vector<8x32xf32>
    %c1_61 = arith.constant 1 : index
    %c0_62 = arith.constant 0 : index
    %c0_63 = arith.constant 0 : index
    %c0_64 = arith.constant 0 : index
    %92 = vector.load %arg6[%c1_61, %c0_62, %c0_63, %c0_64] : memref<2x3x32x32xf32, #tpu.memory_space<vmem>>, vector<1x3x32x32xf32>
    %93 = vector.shape_cast %92 : vector<1x3x32x32xf32> to vector<3x32x32xf32>
    %c1_65 = arith.constant 1 : index
    %c0_66 = arith.constant 0 : index
    %c0_67 = arith.constant 0 : index
    %c0_68 = arith.constant 0 : index
    %94 = vector.load %arg7[%c1_65, %c0_66, %c0_67, %c0_68] : memref<2x3x32x32xf32, #tpu.memory_space<vmem>>, vector<1x3x32x32xf32>
    %95 = vector.shape_cast %94 : vector<1x3x32x32xf32> to vector<3x32x32xf32>
    %cst_69 = arith.constant 1.000000e+00 : f32
    %96 = vector.broadcast %cst_69 : f32 to vector<10x32xf32>
    %c0_70 = arith.constant 0 : index
    %c0_71 = arith.constant 0 : index
    %97 = vector.load %arg20[%c0_70, %c0_71] : memref<10x32xf32, #tpu.memory_space<vmem>>, vector<10x32xf32>
    tpu.vector_store %arg20[%c0_70, %c0_71], %96 {strides = array<i32>} : memref<10x32xf32, #tpu.memory_space<vmem>>, vector<10x32xf32>,
    %c2_72 = arith.constant 2 : index
    %c0_73 = arith.constant 0 : index
    %98 = vector.load %arg20[%c2_72, %c0_73] : memref<10x32xf32, #tpu.memory_space<vmem>>, vector<8x32xf32>
    tpu.vector_store %arg20[%c2_72, %c0_73], %91 {strides = array<i32>} : memref<10x32xf32, #tpu.memory_space<vmem>>, vector<8x32xf32>,
    %cst_74 = arith.constant 0.000000e+00 : f32
    %99 = vector.broadcast %cst_74 : f32 to vector<8x32xf32>
    %cst_75 = arith.constant 0.000000e+00 : f32
    %100 = vector.broadcast %cst_75 : f32 to vector<8x32xf32>
    %c0_76 = arith.constant 0 : index
    %c0_77 = arith.constant 0 : index
    %101 = vector.load %arg20[%c0_76, %c0_77] : memref<10x32xf32, #tpu.memory_space<vmem>>, vector<8x32xf32>
    %102 = vector.extract_strided_slice %93 {offsets = [0, 0, 0], sizes = [1, 32, 32], strides = [1, 1, 1]} : vector<3x32x32xf32> to vector<1x32x32xf32>
    %103 = vector.shape_cast %102 : vector<1x32x32xf32> to vector<32x32xf32>
    %cst_78 = arith.constant dense<0.000000e+00> : vector<8x32xf32>
    %104 = tpu.matmul %101, %103, %cst_78 {dimension_numbers = #tpu.dot_dimension_numbers<[1], [0], [0], [1], [0, 0, 1, 1], [], []>} : vector<8x32xf32>, vector<32x32xf32>, vector<8x32xf32> -> vector<8x32xf32>
    %105 = arith.addf %99, %104 : vector<8x32xf32>
    %106 = vector.extract_strided_slice %95 {offsets = [0, 0, 0], sizes = [1, 32, 32], strides = [1, 1, 1]} : vector<3x32x32xf32> to vector<1x32x32xf32>
    %107 = vector.shape_cast %106 : vector<1x32x32xf32> to vector<32x32xf32>
    %cst_79 = arith.constant dense<0.000000e+00> : vector<8x32xf32>
    %108 = tpu.matmul %101, %107, %cst_79 {dimension_numbers = #tpu.dot_dimension_numbers<[1], [0], [0], [1], [0, 0, 1, 1], [], []>} : vector<8x32xf32>, vector<32x32xf32>, vector<8x32xf32> -> vector<8x32xf32>
    %109 = arith.addf %100, %108 : vector<8x32xf32>
    %c1_80 = arith.constant 1 : index
    %c0_81 = arith.constant 0 : index
    %110 = vector.load %arg20[%c1_80, %c0_81] : memref<10x32xf32, #tpu.memory_space<vmem>>, vector<8x32xf32>
    %111 = vector.extract_strided_slice %93 {offsets = [1, 0, 0], sizes = [1, 32, 32], strides = [1, 1, 1]} : vector<3x32x32xf32> to vector<1x32x32xf32>
    %112 = vector.shape_cast %111 : vector<1x32x32xf32> to vector<32x32xf32>
    %cst_82 = arith.constant dense<0.000000e+00> : vector<8x32xf32>
    %113 = tpu.matmul %110, %112, %cst_82 {dimension_numbers = #tpu.dot_dimension_numbers<[1], [0], [0], [1], [0, 0, 1, 1], [], []>} : vector<8x32xf32>, vector<32x32xf32>, vector<8x32xf32> -> vector<8x32xf32>
    %114 = arith.addf %105, %113 : vector<8x32xf32>
    %115 = vector.extract_strided_slice %95 {offsets = [1, 0, 0], sizes = [1, 32, 32], strides = [1, 1, 1]} : vector<3x32x32xf32> to vector<1x32x32xf32>
    %116 = vector.shape_cast %115 : vector<1x32x32xf32> to vector<32x32xf32>
    %cst_83 = arith.constant dense<0.000000e+00> : vector<8x32xf32>
    %117 = tpu.matmul %110, %116, %cst_83 {dimension_numbers = #tpu.dot_dimension_numbers<[1], [0], [0], [1], [0, 0, 1, 1], [], []>} : vector<8x32xf32>, vector<32x32xf32>, vector<8x32xf32> -> vector<8x32xf32>
    %118 = arith.addf %109, %117 : vector<8x32xf32>
    %c2_84 = arith.constant 2 : index
    %c0_85 = arith.constant 0 : index
    %119 = vector.load %arg20[%c2_84, %c0_85] : memref<10x32xf32, #tpu.memory_space<vmem>>, vector<8x32xf32>
    %120 = vector.extract_strided_slice %93 {offsets = [2, 0, 0], sizes = [1, 32, 32], strides = [1, 1, 1]} : vector<3x32x32xf32> to vector<1x32x32xf32>
    %121 = vector.shape_cast %120 : vector<1x32x32xf32> to vector<32x32xf32>
    %cst_86 = arith.constant dense<0.000000e+00> : vector<8x32xf32>
    %122 = tpu.matmul %119, %121, %cst_86 {dimension_numbers = #tpu.dot_dimension_numbers<[1], [0], [0], [1], [0, 0, 1, 1], [], []>} : vector<8x32xf32>, vector<32x32xf32>, vector<8x32xf32> -> vector<8x32xf32>
    %123 = arith.addf %114, %122 : vector<8x32xf32>
    %124 = vector.extract_strided_slice %95 {offsets = [2, 0, 0], sizes = [1, 32, 32], strides = [1, 1, 1]} : vector<3x32x32xf32> to vector<1x32x32xf32>
    %125 = vector.shape_cast %124 : vector<1x32x32xf32> to vector<32x32xf32>
    %cst_87 = arith.constant dense<0.000000e+00> : vector<8x32xf32>
    %126 = tpu.matmul %119, %125, %cst_87 {dimension_numbers = #tpu.dot_dimension_numbers<[1], [0], [0], [1], [0, 0, 1, 1], [], []>} : vector<8x32xf32>, vector<32x32xf32>, vector<8x32xf32> -> vector<8x32xf32>
    %127 = arith.addf %118, %126 : vector<8x32xf32>
    %c1_88 = arith.constant 1 : index
    %c0_89 = arith.constant 0 : index
    %c0_90 = arith.constant 0 : index
    %128 = vector.load %arg8[%c1_88, %c0_89, %c0_90] : memref<2x1x32xf32, #tpu.memory_space<vmem>>, vector<1x1x32xf32>
    %129 = vector.shape_cast %128 : vector<1x1x32xf32> to vector<1x32xf32>
    %130 = vector.broadcast %129 : vector<1x32xf32> to vector<8x32xf32>
    %131 = arith.addf %123, %130 : vector<8x32xf32>
    %c1_91 = arith.constant 1 : index
    %c0_92 = arith.constant 0 : index
    %c0_93 = arith.constant 0 : index
    %132 = vector.load %arg9[%c1_91, %c0_92, %c0_93] : memref<2x1x32xf32, #tpu.memory_space<vmem>>, vector<1x1x32xf32>
    %133 = vector.shape_cast %132 : vector<1x1x32xf32> to vector<1x32xf32>
    %134 = vector.broadcast %133 : vector<1x32xf32> to vector<8x32xf32>
    %135 = arith.addf %127, %134 : vector<8x32xf32>
    %136 = arith.negf %135 : vector<8x32xf32>
    %137 = math.exp %136 : vector<8x32xf32>
    %cst_94 = arith.constant 1.000000e+00 : f32
    %138 = vector.broadcast %cst_94 : f32 to vector<8x32xf32>
    %139 = arith.addf %138, %137 : vector<8x32xf32>
    %140 = arith.divf %138, %139 : vector<8x32xf32>
    %141 = arith.mulf %131, %140 : vector<8x32xf32>
    %c0_95 = arith.constant 0 : index
    %c0_96 = arith.constant 0 : index
    %142 = vector.load %arg10[%c0_95, %c0_96] : memref<32x32xf32, #tpu.memory_space<vmem>>, vector<32x32xf32>
    %cst_97 = arith.constant dense<0.000000e+00> : vector<8x32xf32>
    %143 = tpu.matmul %141, %142, %cst_97 {dimension_numbers = #tpu.dot_dimension_numbers<[1], [0], [0], [1], [0, 0, 1, 1], [], []>} : vector<8x32xf32>, vector<32x32xf32>, vector<8x32xf32> -> vector<8x32xf32>
    %c0_98 = arith.constant 0 : index
    %c0_99 = arith.constant 0 : index
    %144 = vector.load %arg11[%c0_98, %c0_99] : memref<1x32xf32, #tpu.memory_space<vmem>>, vector<1x32xf32>
    %145 = vector.broadcast %144 : vector<1x32xf32> to vector<8x32xf32>
    %146 = arith.addf %143, %145 : vector<8x32xf32>
    %147 = arith.addf %146, %1 : vector<8x32xf32>
    %cst_100 = arith.constant 0.707106769 : f32
    %148 = vector.broadcast %cst_100 : f32 to vector<8x32xf32>
    %149 = arith.mulf %147, %148 : vector<8x32xf32>
    %cst_101 = arith.constant dense<0.000000e+00> : vector<8x8xf32>
    %150 = tpu.matmul %149, %3, %cst_101 {dimension_numbers = #tpu.dot_dimension_numbers<[1], [1], [0], [0], [0, 0, 1, 0], [], []>} : vector<8x32xf32>, vector<8x32xf32>, vector<8x8xf32> -> vector<8x8xf32>
    %cst_102 = arith.constant dense<0xFF800000> : vector<8xf32>
    %151 = vector.multi_reduction <maximumf>, %150, %cst_102 [1] : vector<8x8xf32> to vector<8xf32>
    %152 = vector.shape_cast %151 : vector<8xf32> to vector<8x1xf32>
    %153 = vector.broadcast %152 : vector<8x1xf32> to vector<8x8xf32>
    %154 = arith.subf %150, %153 : vector<8x8xf32>
    %155 = math.exp %154 : vector<8x8xf32>
    %cst_103 = arith.constant dense<0.000000e+00> : vector<8xf32>
    %156 = vector.multi_reduction <add>, %155, %cst_103 [1] : vector<8x8xf32> to vector<8xf32>
    %157 = vector.shape_cast %156 : vector<8xf32> to vector<8x1xf32>
    %158 = tpu.reciprocal %157 {approx = true} : vector<8x1xf32> -> vector<8x1xf32>
    %159 = vector.broadcast %158 : vector<8x1xf32> to vector<8x8xf32>
    %160 = arith.mulf %155, %159 : vector<8x8xf32>
    %cst_104 = arith.constant dense<0.000000e+00> : vector<8x32xf32>
    %161 = tpu.matmul %160, %5, %cst_104 {dimension_numbers = #tpu.dot_dimension_numbers<[1], [0], [0], [1], [0, 0, 1, 1], [], []>} : vector<8x8xf32>, vector<8x32xf32>, vector<8x32xf32> -> vector<8x32xf32>
    %c0_105 = arith.constant 0 : index
    %c0_106 = arith.constant 0 : index
    %162 = vector.load %arg12[%c0_105, %c0_106] : memref<32x32xf32, #tpu.memory_space<vmem>>, vector<32x32xf32>
    %cst_107 = arith.constant dense<0.000000e+00> : vector<8x32xf32>
    %163 = tpu.matmul %161, %162, %cst_107 {dimension_numbers = #tpu.dot_dimension_numbers<[1], [0], [0], [1], [0, 0, 1, 1], [], []>} : vector<8x32xf32>, vector<32x32xf32>, vector<8x32xf32> -> vector<8x32xf32>
    %c0_108 = arith.constant 0 : index
    %c0_109 = arith.constant 0 : index
    %164 = vector.load %arg13[%c0_108, %c0_109] : memref<1x32xf32, #tpu.memory_space<vmem>>, vector<1x32xf32>
    %165 = vector.broadcast %164 : vector<1x32xf32> to vector<8x32xf32>
    %166 = arith.addf %163, %165 : vector<8x32xf32>
    %167 = arith.addf %141, %166 : vector<8x32xf32>
    %cst_110 = arith.constant 0.707106769 : f32
    %168 = vector.broadcast %cst_110 : f32 to vector<8x32xf32>
    %169 = arith.mulf %167, %168 : vector<8x32xf32>
    %170 = arith.addf %169, %91 : vector<8x32xf32>
    %cst_111 = arith.constant 0.707106769 : f32
    %171 = vector.broadcast %cst_111 : f32 to vector<8x32xf32>
    %172 = arith.mulf %170, %171 : vector<8x32xf32>
    %c0_112 = arith.constant 0 : index
    %c0_113 = arith.constant 0 : index
    %c0_114 = arith.constant 0 : index
    %173 = vector.load %arg19[%c0_112, %c0_113, %c0_114] : memref<1x8x8xf32, #tpu.memory_space<vmem>>, vector<1x8x8xf32>
    %174 = vector.shape_cast %173 : vector<1x8x8xf32> to vector<8x8xf32>
    %175 = vector.shape_cast %160 : vector<8x8xf32> to vector<1x8x8xf32>
    tpu.vector_store %arg19[%c0_112, %c0_113, %c0_114], %175 {strides = array<i32>} : memref<1x8x8xf32, #tpu.memory_space<vmem>>, vector<1x8x8xf32>,
    %c0_115 = arith.constant 0 : index
    %c0_116 = arith.constant 0 : index
    %176 = vector.load %arg14[%c0_115, %c0_116] : memref<32x32xf32, #tpu.memory_space<vmem>>, vector<32x32xf32>
    %cst_117 = arith.constant dense<0.000000e+00> : vector<8x32xf32>
    %177 = tpu.matmul %172, %176, %cst_117 {dimension_numbers = #tpu.dot_dimension_numbers<[1], [0], [0], [1], [0, 0, 1, 1], [], []>} : vector<8x32xf32>, vector<32x32xf32>, vector<8x32xf32> -> vector<8x32xf32>
    %c0_118 = arith.constant 0 : index
    %c0_119 = arith.constant 0 : index
    %178 = vector.load %arg15[%c0_118, %c0_119] : memref<1x32xf32, #tpu.memory_space<vmem>>, vector<1x32xf32>
    %179 = vector.broadcast %178 : vector<1x32xf32> to vector<8x32xf32>
    %180 = arith.addf %177, %179 : vector<8x32xf32>
    %c0_120 = arith.constant 0 : index
    %c0_121 = arith.constant 0 : index
    %181 = vector.load %arg16[%c0_120, %c0_121] : memref<32x128xf32, #tpu.memory_space<vmem>>, vector<32x128xf32>
    %cst_122 = arith.constant dense<0.000000e+00> : vector<8x128xf32>
    %182 = tpu.matmul %180, %181, %cst_122 {dimension_numbers = #tpu.dot_dimension_numbers<[1], [0], [0], [1], [0, 0, 1, 1], [], []>} : vector<8x32xf32>, vector<32x128xf32>, vector<8x128xf32> -> vector<8x128xf32>
    %c0_123 = arith.constant 0 : index
    %c0_124 = arith.constant 0 : index
    %183 = vector.load %arg17[%c0_123, %c0_124] : memref<1x128xf32, #tpu.memory_space<vmem>>, vector<1x128xf32>
    %184 = vector.broadcast %183 : vector<1x128xf32> to vector<8x128xf32>
    %185 = arith.addf %182, %184 : vector<8x128xf32>
    %c0_125 = arith.constant 0 : index
    %c0_126 = arith.constant 0 : index
    %c0_127 = arith.constant 0 : index
    %186 = vector.load %arg18[%c0_125, %c0_126, %c0_127] : memref<1x8x128xf32, #tpu.memory_space<vmem>>, vector<1x8x128xf32>
    %187 = vector.shape_cast %186 : vector<1x8x128xf32> to vector<8x128xf32>
    %188 = vector.shape_cast %185 : vector<8x128xf32> to vector<1x8x128xf32>
    tpu.vector_store %arg18[%c0_125, %c0_126, %c0_127], %188 {strides = array<i32>} : memref<1x8x128xf32, #tpu.memory_space<vmem>>, vector<1x8x128xf32>,
    return
  }
  func.func @transform_0(%arg0: i32) -> (i32, i32, i32) {
    %c0_i32 = arith.constant 0 : i32
    %c0_i32_0 = arith.constant 0 : i32
    %c0_i32_1 = arith.constant 0 : i32
    return %arg0, %c0_i32, %c0_i32_0 : i32, i32, i32
  }
  func.func @transform_1(%arg0: i32) -> (i32, i32, i32) {
    %c0_i32 = arith.constant 0 : i32
    %c0_i32_0 = arith.constant 0 : i32
    %c0_i32_1 = arith.constant 0 : i32
    return %arg0, %c0_i32, %c0_i32_0 : i32, i32, i32
  }
  func.func @transform_2(%arg0: i32) -> (i32, i32, i32) {
    %c0_i32 = arith.constant 0 : i32
    %c0_i32_0 = arith.constant 0 : i32
    %c0_i32_1 = arith.constant 0 : i32
    return %arg0, %c0_i32, %c0_i32_0 : i32, i32, i32
  }
  func.func @transform_3(%arg0: i32) -> (i32, i32) {
    %c0_i32 = arith.constant 0 : i32
    %c0_i32_0 = arith.constant 0 : i32
    %c0_i32_1 = arith.constant 0 : i32
    return %c0_i32, %c0_i32_0 : i32, i32
  }
  func.func @transform_4(%arg0: i32) -> (i32, i32) {
    %c0_i32 = arith.constant 0 : i32
    %c0_i32_0 = arith.constant 0 : i32
    %c0_i32_1 = arith.constant 0 : i32
    return %c0_i32, %c0_i32_0 : i32, i32
  }
  func.func @transform_5(%arg0: i32) -> (i32, i32, i32, i32) {
    %c0_i32 = arith.constant 0 : i32
    %c0_i32_0 = arith.constant 0 : i32
    %c0_i32_1 = arith.constant 0 : i32
    %c0_i32_2 = arith.constant 0 : i32
    %c0_i32_3 = arith.constant 0 : i32
    return %c0_i32, %c0_i32_0, %c0_i32_1, %c0_i32_2 : i32, i32, i32, i32
  }
  func.func @transform_6(%arg0: i32) -> (i32, i32, i32, i32) {
    %c0_i32 = arith.constant 0 : i32
    %c0_i32_0 = arith.constant 0 : i32
    %c0_i32_1 = arith.constant 0 : i32
    %c0_i32_2 = arith.constant 0 : i32
    %c0_i32_3 = arith.constant 0 : i32
    return %c0_i32, %c0_i32_0, %c0_i32_1, %c0_i32_2 : i32, i32, i32, i32
  }
  func.func @transform_7(%arg0: i32) -> (i32, i32, i32) {
    %c0_i32 = arith.constant 0 : i32
    %c0_i32_0 = arith.constant 0 : i32
    %c0_i32_1 = arith.constant 0 : i32
    %c0_i32_2 = arith.constant 0 : i32
    return %c0_i32, %c0_i32_0, %c0_i32_1 : i32, i32, i32
  }
  func.func @transform_8(%arg0: i32) -> (i32, i32, i32) {
    %c0_i32 = arith.constant 0 : i32
    %c0_i32_0 = arith.constant 0 : i32
    %c0_i32_1 = arith.constant 0 : i32
    %c0_i32_2 = arith.constant 0 : i32
    return %c0_i32, %c0_i32_0, %c0_i32_1 : i32, i32, i32
  }
  func.func @transform_9(%arg0: i32) -> (i32, i32) {
    %c0_i32 = arith.constant 0 : i32
    %c0_i32_0 = arith.constant 0 : i32
    %c0_i32_1 = arith.constant 0 : i32
    return %c0_i32, %c0_i32_0 : i32, i32
  }
  func.func @transform_10(%arg0: i32) -> (i32, i32) {
    %c0_i32 = arith.constant 0 : i32
    %c0_i32_0 = arith.constant 0 : i32
    %c0_i32_1 = arith.constant 0 : i32
    return %c0_i32, %c0_i32_0 : i32, i32
  }
  func.func @transform_11(%arg0: i32) -> (i32, i32) {
    %c0_i32 = arith.constant 0 : i32
    %c0_i32_0 = arith.constant 0 : i32
    %c0_i32_1 = arith.constant 0 : i32
    return %c0_i32, %c0_i32_0 : i32, i32
  }
  func.func @transform_12(%arg0: i32) -> (i32, i32) {
    %c0_i32 = arith.constant 0 : i32
    %c0_i32_0 = arith.constant 0 : i32
    %c0_i32_1 = arith.constant 0 : i32
    return %c0_i32, %c0_i32_0 : i32, i32
  }
  func.func @transform_13(%arg0: i32) -> (i32, i32) {
    %c0_i32 = arith.constant 0 : i32
    %c0_i32_0 = arith.constant 0 : i32
    %c0_i32_1 = arith.constant 0 : i32
    return %c0_i32, %c0_i32_0 : i32, i32
  }
  func.func @transform_14(%arg0: i32) -> (i32, i32) {
    %c0_i32 = arith.constant 0 : i32
    %c0_i32_0 = arith.constant 0 : i32
    %c0_i32_1 = arith.constant 0 : i32
    return %c0_i32, %c0_i32_0 : i32, i32
  }
  func.func @transform_15(%arg0: i32) -> (i32, i32) {
    %c0_i32 = arith.constant 0 : i32
    %c0_i32_0 = arith.constant 0 : i32
    %c0_i32_1 = arith.constant 0 : i32
    return %c0_i32, %c0_i32_0 : i32, i32
  }
  func.func @transform_16(%arg0: i32) -> (i32, i32) {
    %c0_i32 = arith.constant 0 : i32
    %c0_i32_0 = arith.constant 0 : i32
    %c0_i32_1 = arith.constant 0 : i32
    return %c0_i32, %c0_i32_0 : i32, i32
  }
  func.func @transform_17(%arg0: i32) -> (i32, i32, i32) {
    %c0_i32 = arith.constant 0 : i32
    %c0_i32_0 = arith.constant 0 : i32
    %c0_i32_1 = arith.constant 0 : i32
    return %arg0, %c0_i32, %c0_i32_0 : i32, i32, i32
  }
  func.func @transform_18(%arg0: i32) -> (i32, i32, i32) {
    %c0_i32 = arith.constant 0 : i32
    %c0_i32_0 = arith.constant 0 : i32
    %c0_i32_1 = arith.constant 0 : i32
    return %arg0, %c0_i32, %c0_i32_0 : i32, i32, i32
  }
}

</mosaic_0001>

<bundles_post_ra>
// kernel: seq2seq_forward.2
= control target key start
LH: loop header
LB: loop body
LE: loop exit
PB: predicated region body
PF: predicated region fallthrough
CT: control target
= control target key end

     0   :  { %s1048_s13 = smov 0   ;;  %s1293_s0 = inlined_call_operand.vmem [shape: f32[2,8,32], index: 0, kind: input, shape index: {}]   ;;  %s1294_s1 = inlined_call_operand.vmem [shape: f32[32,32], index: 1, kind: input, shape index: {}]   ;;  %s1295_s2 = inlined_call_operand.vmem [shape: f32[1,32], index: 2, kind: input, shape index: {}]   ;;  %s1296_s3 = inlined_call_operand.vmem [shape: f32[2,3,32,32], index: 3, kind: input, shape index: {}]   ;;  %s1297_s4 = inlined_call_operand.vmem [shape: f32[2,3,32,32], index: 4, kind: input, shape index: {}]   ;;  %s1298_s5 = inlined_call_operand.vmem [shape: f32[2,1,32], index: 5, kind: input, shape index: {}]   ;;  %s1299_s6 = inlined_call_operand.vmem [shape: f32[2,1,32], index: 6, kind: input, shape index: {}]   ;;  %s1300_s7 = inlined_call_operand.vmem [shape: f32[32,32], index: 7, kind: input, shape index: {}]   ;;  %s1301_s8 = inlined_call_operand.vmem [shape: f32[1,32], index: 8, kind: input, shape index: {}]   ;;  %s1302_s9 = inlined_call_operand.vmem [shape: f32[2,8,32], index: 9, kind: output, shape index: {0}]   ;;  %s1303_s10 = inlined_call_operand.vmem [shape: f32[2,8,32], index: 10, kind: output, shape index: {1}]  }
   0x1 LB: > { %s909_s14 = sadd.s32 4294967295, %s990_s13   ;;  %p913_p0 = scmp.ge.s32.totalorder %s990_s13, 1  ;;  %s990_s13 = sphi %s1048_s13, %s21_s13  }
   0x2   : > { %p314_p1 = scmp.lt.s32.totalorder %s990_s13, 3 }
   0x4   : > { %p315_p2 = pnand %p913_p0, %p314_p1 }
   0x5   : > { %p354_p3 = scmp.lt.s32.totalorder (!%p315_p2), %s909_s14, 1 }
   0x6   : > { %318 = sbr.rel (%p315_p2) target bundleno = 648 (0x288), region = 56 }
   0xb   : > { %v370_v0 = vld [vmem:[%s1294_s1 + $0x18] sm:$0xff]  ;;  %v369_v1 = vld [vmem:[%s1294_s1 + $0x10] sm:$0xff]  ;;  %v368_v2 = vld [vmem:[%s1294_s1 + $0x8] sm:$0xff]  ;;  %s1305_s14 = smov (!%p354_p3, %s909_s14), 1  ;;  %vm375_vm0 = vcmask 261120   ;;  %vm424_vm1 = vcmask 254976  }
   0xc   : > { %391 = vmatpush.msra.mxu0 %v370_v0  ;;  %v367_v3 = vld [vmem:[%s1294_s1] sm:$0xff]  ;;  %s1068_s23 = sshll.u32 %s1305_s14, 3  ;;  %v992_v5 = vmov 0.0   ;;  %v406_v6 = vld [vmem:[%s1296_s3 + $0x38] sm:$0xff]  ;;  %v405_v10 = vld [vmem:[%s1296_s3 + $0x30] sm:$0xff] }
   0xd   : > { %s357_s26 = scalar_lea.vmem %s1293_s0, %s1068_s23  ;;  %423 = vst.msk [vmem:[#allocation2] sm:$0xff] %vm375_vm0, %v992_v5  ;;  %v402_v7 = vld [vmem:[%s1296_s3 + $0x18] sm:$0xff]  ;;  %444 = vmatpush.msra.mxu1 %v406_v6  ;;  %v401_v11 = vld [vmem:[%s1296_s3 + $0x10] sm:$0xff]  ;;  %v404_v14 = vld [vmem:[%s1296_s3 + $0x28] sm:$0xff]  ;;  %s361_s18 = scalar_lea.vmem %s1302_s9, %s1068_s23 }
   0xe   : > { %392 = vmatpush.msra.mxu0 %v369_v1  ;;  %v1074_v4 = vld [vmem:[%s357_s26] sm:$0xff]  ;;  %425 = vst.msk [vmem:[#allocation2 + $0x8] sm:$0x3] %vm424_vm1, %v992_v5  ;;  %v418_v8 = vld [vmem:[%s1297_s4 + $0x38] sm:$0xff]  ;;  %467 = vmatpush.msra.mxu2 %v402_v7  ;;  %v417_v12 = vld [vmem:[%s1297_s4 + $0x30] sm:$0xff]  ;;  %s365_s21 = scalar_lea.vmem %s1303_s10, %s1068_s23 }
   0xf   : > { %v414_v9 = vld [vmem:[%s1297_s4 + $0x18] sm:$0xff]  ;;  %487 = vmatpush.msra.mxu3 %v418_v8  ;;  %v413_v13 = vld [vmem:[%s1297_s4 + $0x10] sm:$0xff]  ;;  %445 = vmatpush.msra.mxu1 %v405_v10  ;;  %v400_v15 = vld [vmem:[%s1296_s3 + $0x8] sm:$0xff] }
  0x10   : > { %393 = vmatpush.msra.mxu0 %v368_v2  ;;  %468 = vmatpush.msra.mxu2 %v401_v11  ;;  %v416_v16 = vld [vmem:[%s1297_s4 + $0x28] sm:$0xff]  ;;  %v403_v18 = vld [vmem:[%s1296_s3 + $0x20] sm:$0xff]  ;;  %v422_v22 = vld [vmem:[%s1297_s4 + $0x58] sm:$0xff] }
  0x11   : > { %v412_v17 = vld [vmem:[%s1297_s4 + $0x8] sm:$0xff]  ;;  %488 = vmatpush.msra.mxu3 %v417_v12  ;;  %v399_v19 = vld [vmem:[%s1296_s3] sm:$0xff]  ;;  %446 = vmatpush.msra.mxu1 %v404_v14  ;;  %v410_v23 = vld [vmem:[%s1296_s3 + $0x58] sm:$0xff] }
  0x12   : > { %394 = vmatpush.msra.mxu0 %v367_v3  ;;  %469 = vmatpush.msra.mxu2 %v400_v15  ;;  %v415_v20 = vld [vmem:[%s1297_s4 + $0x20] sm:$0xff]  ;;  %v421_v24 = vld [vmem:[%s1297_s4 + $0x50] sm:$0xff]  ;;  %v420_v26 = vld [vmem:[%s1297_s4 + $0x48] sm:$0xff] }
  0x13   : > { %917 = vmatmul.msk.f32.vlgmr.msra.gmra.mxu0 %vm375_vm0, %v1074_v4  ;;  %v411_v21 = vld [vmem:[%s1297_s4] sm:$0xff]  ;;  %489 = vmatpush.msra.mxu3 %v416_v16  ;;  %v409_v25 = vld [vmem:[%s1296_s3 + $0x50] sm:$0xff]  ;;  %v408_v27 = vld [vmem:[%s1296_s3 + $0x48] sm:$0xff] }
  0x14   : > { %507 = vmatpush.msrb.mxu0 %v414_v9  ;;  %447 = vmatpush.msra.mxu1 %v403_v18  ;;  %v419_v28 = vld [vmem:[%s1297_s4 + $0x40] sm:$0xff]  ;;  %v928_v45 = vld [vmem:[%s1296_s3 + $0x78] sm:$0xff]  ;;  %v927_v49 = vld [vmem:[%s1296_s3 + $0x70] sm:$0xff] }
  0x15   : > { %470 = vmatpush.msra.mxu2 %v399_v19  ;;  %490 = vmatpush.msra.mxu3 %v415_v20  ;;  %v407_v29 = vld [vmem:[%s1296_s3 + $0x40] sm:$0xff]  ;;  %v940_v46 = vld [vmem:[%s1297_s4 + $0x78] sm:$0xff]  ;;  %v939_v50 = vld [vmem:[%s1297_s4 + $0x70] sm:$0xff] }
  0x16   : > { %508 = vmatpush.msrb.mxu0 %v413_v13  ;;  %531 = vmatpush.msrb.mxu1 %v410_v23  ;;  %v970_v30 = vld [vmem:[%s1295_s2] ss:$0 sm:$0xff]  ;;  %v932_v47 = vld [vmem:[%s1296_s3 + $0x98] sm:$0xff]  ;;  %v931_v51 = vld [vmem:[%s1296_s3 + $0x90] sm:$0xff] }
  0x17   : > { %552 = vmatpush.msrb.mxu2 %v422_v22  ;;  %v972_v40 = vld [vmem:[%s1299_s6] ss:$0 sm:$0xff]  ;;  %v944_v48 = vld [vmem:[%s1297_s4 + $0x98] sm:$0xff]  ;;  %639 = vmatpush.msrb.mxu3 %v932_v47  ;;  %v943_v52 = vld [vmem:[%s1297_s4 + $0x90] sm:$0xff] }
  0x18   : > { %509 = vmatpush.msrb.mxu0 %v412_v17  ;;  %532 = vmatpush.msrb.mxu1 %v409_v25  ;;  %v926_v53 = vld [vmem:[%s1296_s3 + $0x68] sm:$0xff]  ;;  %v925_v57 = vld [vmem:[%s1296_s3 + $0x60] sm:$0xff]  ;;  %v948_v0 = vld [vmem:[%s1297_s4 + $0xb8] sm:$0xff] }
  0x19   : > { %553 = vmatpush.msrb.mxu2 %v421_v24  ;;  %v938_v54 = vld [vmem:[%s1297_s4 + $0x68] sm:$0xff]  ;;  %640 = vmatpush.msrb.mxu3 %v931_v51  ;;  %v937_v58 = vld [vmem:[%s1297_s4 + $0x60] sm:$0xff]  ;;  %v936_v1 = vld [vmem:[%s1296_s3 + $0xb8] sm:$0xff] }
  0x1a   : > { %510 = vmatpush.msrb.mxu0 %v411_v21  ;;  %533 = vmatpush.msrb.mxu1 %v408_v27  ;;  %v930_v55 = vld [vmem:[%s1296_s3 + $0x88] sm:$0xff]  ;;  %v929_v59 = vld [vmem:[%s1296_s3 + $0x80] sm:$0xff]  ;;  %v947_v2 = vld [vmem:[%s1297_s4 + $0xb0] sm:$0xff] }
  0x1b   : > { %554 = vmatpush.msrb.mxu2 %v420_v26  ;;  %v942_v56 = vld [vmem:[%s1297_s4 + $0x88] sm:$0xff]  ;;  %v941_v60 = vld [vmem:[%s1297_s4 + $0x80] sm:$0xff]  ;;  %641 = vmatpush.msrb.mxu3 %v930_v55  ;;  %v935_v3 = vld [vmem:[%s1296_s3 + $0xb0] sm:$0xff] }
  0x1c   : > { %534 = vmatpush.msrb.mxu1 %v407_v29  ;;  %662 = vmatpush.msra.mxu0 %v928_v45  ;;  %v934_v6 = vld [vmem:[%s1296_s3 + $0xa8] sm:$0xff]  ;;  %v945_v7 = vld [vmem:[%s1297_s4 + $0xa0] sm:$0xff] }
  0x1d   : > { %555 = vmatpush.msrb.mxu2 %v419_v28  ;;  %642 = vmatpush.msrb.mxu3 %v929_v59  ;;  %v933_v8 = vld [vmem:[%s1296_s3 + $0xa0] sm:$0xff] }
  0x1e   : > { %663 = vmatpush.msra.mxu0 %v927_v49  ;;  %v971_v16 = vld [vmem:[%s1298_s5] ss:$0 sm:$0xff] }
  0x20   : > { %664 = vmatpush.msra.mxu0 %v926_v53  ;;  %v974_v53 = vld [vmem:[%s1298_s5 + $0x1] ss:$0 sm:$0xff] }
  0x22   : > { %665 = vmatpush.msra.mxu0 %v925_v57 }
  0x90   : > { %v396_v31 = vpop.f32.mrf.mxu0 }
  0x91   : > { %v1157_v32 = vadd.f32 %v970_v30, %v396_v31 }
  0x93   : > { %426 = vst.msk [vmem:[#allocation2 + $0x1] sm:$0xff] %vm375_vm0, %v1157_v32 }
  0x9a   : > { %v428_v33 = vld [vmem:[#allocation2 + $0x1] sm:$0xff] }
  0x9b   : > { %v427_v34 = vld [vmem:[#allocation2] sm:$0xff]  ;;  %918 = vmatmul.msk.f32.vlgmr.msra.gmra.mxu1 %vm375_vm0, %v428_v33  ;;  %920 = vmatmul.msk.f32.vlgmr.msra.gmra.mxu3 %vm375_vm0, %v428_v33 }
  0x9c   : > { %v515_v35 = vld [vmem:[#allocation2 + $0x2] sm:$0xff]  ;;  %919 = vmatmul.msk.f32.vlgmr.msra.gmra.mxu2 %vm375_vm0, %v427_v34  ;;  %921 = vmatmul.msk.f32.vlgmr.msrb.gmra.mxu0 %vm375_vm0, %v427_v34 }
  0x9d   : > { %619 = vst.msk [vmem:[#allocation2] sm:$0xff] %vm375_vm0, %v992_v5  ;;  %702 = vmatpush.msra.mxu2 %v940_v46  ;;  %682 = vmatpush.msra.mxu1 %v944_v48 }
  0x9e   : > { %620 = vst.msk [vmem:[#allocation2 + $0x8] sm:$0x3] %vm424_vm1, %v992_v5  ;;  %747 = vmatpush.msrb.mxu0 %v948_v0  ;;  %726 = vmatpush.msra.mxu3 %v936_v1  ;;  %v946_v5 = vld [vmem:[%s1297_s4 + $0xa8] sm:$0xff]  ;;  %v975_v0 = vld [vmem:[%s1301_s8] ss:$0 sm:$0xff] }
  0x9f   : > { %703 = vmatpush.msra.mxu2 %v939_v50  ;;  %683 = vmatpush.msra.mxu1 %v943_v52 }
  0xa0   : > { %748 = vmatpush.msrb.mxu0 %v947_v2  ;;  %727 = vmatpush.msra.mxu3 %v935_v3 }
  0xa1   : > { %704 = vmatpush.msra.mxu2 %v938_v54  ;;  %684 = vmatpush.msra.mxu1 %v942_v56 }
  0xa2   : > { %749 = vmatpush.msrb.mxu0 %v946_v5  ;;  %728 = vmatpush.msra.mxu3 %v934_v6 }
  0xa3   : > { %922 = vmatmul.msk.f32.vlgmr.msrb.gmra.mxu1 %vm375_vm0, %v515_v35  ;;  %705 = vmatpush.msra.mxu2 %v937_v58 }
  0xa4   : > { %923 = vmatmul.msk.f32.vlgmr.msrb.gmra.mxu2 %vm375_vm0, %v515_v35  ;;  %685 = vmatpush.msra.mxu1 %v941_v60  ;;  %v973_v35 = vld [vmem:[%s1299_s6 + $0x1] ss:$0 sm:$0xff] }
  0xa5   : > { %750 = vmatpush.msrb.mxu0 %v945_v7  ;;  %729 = vmatpush.msra.mxu3 %v933_v8 }
 0x118   : > { %v449_v62 = vpop.f32.mrf.mxu1 }
 0x119   : > { %v512_v38 = vpop.f32.mrf.mxu0 }
 0x11e   : > { %v492_v37 = vpop.f32.mrf.mxu3 }
 0x11f   : > { %v472_v36 = vpop.f32.mrf.mxu2  ;;  %v513_v39 = vadd.f32 %v512_v38, %v492_v37  ;;  %v792_v38 = vld [vmem:[%s1300_s7 + $0x10] sm:$0xff] }
 0x120   : > { %v473_v10 = vadd.f32 %v472_v36, %v449_v62  ;;  %v536_v12 = vpop.f32.mrf.mxu1  ;;  %v793_v36 = vld [vmem:[%s1300_s7 + $0x18] sm:$0xff] }
 0x121   : > { %813 = vmatpush.msrb.mxu1 %v793_v36 }
 0x122   : > { %v539_v15 = vadd.f32 %v536_v12, %v473_v10 }
 0x123   : > { %814 = vmatpush.msrb.mxu1 %v792_v38 }
 0x124   : > { %v565_v21 = vadd.f32 %v971_v16, %v539_v15 }
 0x127   : > { %v557_v41 = vpop.f32.mrf.mxu2 }
 0x128   : > { %v560_v42 = vadd.f32 %v557_v41, %v513_v39 }
 0x12a   : > { %v570_v43 = vadd.f32 %v972_v40, %v560_v42  ;;  %v791_v40 = vld [vmem:[%s1300_s7 + $0x8] sm:$0xff]  ;;  %v790_v42 = vld [vmem:[%s1300_s7] sm:$0xff] }
 0x12b   : > { %815 = vmatpush.msrb.mxu1 %v791_v40 }
 0x12c   : > { %v924_v44 = vmul.f32 -1.442695, %v570_v43 }
 0x12d   : > { %816 = vmatpush.msrb.mxu1 %v790_v42 }
 0x12e   : > { %976 = vpow2.f32 %v924_v44 }
 0x134   : > { %v977_v61 = vpop.eup %976 }
 0x135   : > { %v574_v63 = vadd.f32 1.0, %v977_v61 }
 0x137   : > { %978 = vrcp.f32 %v574_v63  ;;  %v586_v14 = vand.u32 2147483648, %v574_v63  ;;  %v584_v18 = vand.u32 2147483647, %v574_v63  ;;  %vm580_vm3 = vweird.f32 %v574_v63 }
 0x139   : > { %v587_v20 = vor.u32 1.1754944e-38, %v586_v14  ;;  %vm585_vm5 = vcmp.eq.f32.partialorder %v584_v18, 8.507059e+37 }
 0x13d   : > { %v979_v9 = vpop.eup %978 }
 0x13e   : > { %v576_v11 = vmul.f32 %v979_v9, %v574_v63  ;;  %vm581_vm2 = vweird.f32 %v979_v9 }
 0x13f   : > { %vm582_vm4 = vmor %vm580_vm3, %vm581_vm2 }
 0x140   : > { %v577_v13 = vsub.f32 1.0, %v576_v11 }
 0x142   : > { %v578_v17 = vmul.f32 %v979_v9, %v577_v13 }
 0x144   : > { %v579_v19 = vadd.f32 %v979_v9, %v578_v17 }
 0x146   : > { %v583_v22 = vsel %vm582_vm4, %v979_v9, %v579_v19 }
 0x147   : > { %v588_v23 = vsel %vm585_vm5, %v587_v20, %v583_v22 }
 0x148   : > { %v590_v24 = vmul.f32 %v588_v23, %v565_v21 }
 0x14a   : > { %v591_v25 = vadd.f32 %v590_v24, %v1157_v32 }
 0x14c   : > { %v592_v26 = vmul.f32 0.70710677, %v591_v25 }
 0x14e   : > { %621 = vst.msk [vmem:[#allocation2 + $0x1] sm:$0xff] %vm375_vm0, %v592_v26 }
 0x155   : > { %v623_v27 = vld [vmem:[#allocation2 + $0x1] sm:$0xff] }
 0x156   : > { %v622_v28 = vld [vmem:[#allocation2] sm:$0xff]  ;;  %949 = vmatmul.msk.f32.vlgmr.msrb.gmra.mxu3 %vm375_vm0, %v623_v27  ;;  %951 = vmatmul.msk.f32.vlgmr.msra.gmra.mxu1 %vm375_vm0, %v623_v27 }
 0x157   : > { %950 = vmatmul.msk.f32.vlgmr.msra.gmra.mxu0 %vm375_vm0, %v622_v28  ;;  %952 = vmatmul.msk.f32.vlgmr.msra.gmra.mxu2 %vm375_vm0, %v622_v28  ;;  %v710_v29 = vld [vmem:[#allocation2 + $0x2] sm:$0xff] }
 0x15e   : > { %953 = vmatmul.msk.f32.vlgmr.msra.gmra.mxu3 %vm375_vm0, %v710_v29 }
 0x15f   : > { %954 = vmatmul.msk.f32.vlgmr.msrb.gmra.mxu0 %vm375_vm0, %v710_v29 }
 0x1d3   : > { %v687_v31 = vpop.f32.mrf.mxu1 }
 0x1d4   : > { %v667_v30 = vpop.f32.mrf.mxu0 }
 0x1d9   : > { %v644_v44 = vpop.f32.mrf.mxu3 }
 0x1da   : > { %v707_v32 = vpop.f32.mrf.mxu2  ;;  %v668_v49 = vadd.f32 %v667_v30, %v644_v44 }
 0x1db   : > { %v708_v33 = vadd.f32 %v707_v32, %v687_v31 }
 0x1dc   : > { %v752_v34 = vpop.f32.mrf.mxu0 }
 0x1dd   : > { %v755_v37 = vadd.f32 %v752_v34, %v708_v33 }
 0x1df   : > { %v767_v39 = vadd.f32 %v973_v35, %v755_v37 }
 0x1e1   : > { %v957_v41 = vmul.f32 -1.442695, %v767_v39  ;;  %v731_v48 = vpop.f32.mrf.mxu3 }
 0x1e2   : > { %v734_v52 = vadd.f32 %v731_v48, %v668_v49 }
 0x1e3   : > { %980 = vpow2.f32 %v957_v41 }
 0x1e4   : > { %v761_v58 = vadd.f32 %v974_v53, %v734_v52 }
 0x1e9   : > { %v981_v43 = vpop.eup %980 }
 0x1ea   : > { %v771_v45 = vadd.f32 1.0, %v981_v43 }
 0x1ec   : > { %982 = vrcp.f32 %v771_v45  ;;  %v783_v51 = vand.u32 2147483648, %v771_v45  ;;  %v781_v55 = vand.u32 2147483647, %v771_v45  ;;  %vm777_vm7 = vweird.f32 %v771_v45 }
 0x1ee   : > { %v784_v57 = vor.u32 1.1754944e-38, %v783_v51  ;;  %vm782_vm9 = vcmp.eq.f32.partialorder %v781_v55, 8.507059e+37 }
 0x1f2   : > { %v983_v46 = vpop.eup %982 }
 0x1f3   : > { %v773_v47 = vmul.f32 %v983_v46, %v771_v45  ;;  %vm778_vm6 = vweird.f32 %v983_v46 }
 0x1f4   : > { %vm779_vm8 = vmor %vm777_vm7, %vm778_vm6 }
 0x1f5   : > { %v774_v50 = vsub.f32 1.0, %v773_v47 }
 0x1f7   : > { %v775_v54 = vmul.f32 %v983_v46, %v774_v50 }
 0x1f9   : > { %v776_v56 = vadd.f32 %v983_v46, %v775_v54 }
 0x1fb   : > { %v780_v59 = vsel %vm779_vm8, %v983_v46, %v776_v56 }
 0x1fc   : > { %v785_v60 = vsel %vm782_vm9, %v784_v57, %v780_v59 }
 0x1fd   : > { %v787_v61 = vmul.f32 %v785_v60, %v761_v58 }
 0x1ff   : > { %v788_v62 = vadd.f32 %v787_v61, %v592_v26 }
 0x201   : > { %v789_v63 = vmul.f32 0.70710677, %v788_v62 }
 0x203   : > { %958 = vmatmul.msk.f32.vlgmr.msrb.gmra.mxu1 %vm375_vm0, %v789_v63 }
 0x280   : > { %v818_v1 = vpop.f32.mrf.mxu1 }
 0x281   : > { %v819_v2 = vadd.f32 %v975_v0, %v818_v1 }
 0x283   : > { %821 = vst.msk [vmem:[%s361_s18] sm:$0xff] %vm375_vm0, %v819_v2  ;;  %v822_v3 = vadd.f32 %v819_v2, %v1074_v4 }
 0x285   : > { %v823_v5 = vmul.f32 0.70710677, %v822_v3 }
 0x287   : > { %824 = vst.msk [vmem:[%s365_s21] sm:$0xff] %vm375_vm0, %v823_v5 }
 0x288 PF: > { %s21_s13 = sadd.s32 1, %s990_s13  }
 0x289   : > { %p18_p4 = scmp.ge.s32.totalorder %s21_s13, 4  }
 0x28b   :  { %20 = sbr.rel (!%p18_p4) target bundleno = 1 (0x1), region = 102 }

// kernel: seq2seq_forward.3
= control target key start
LH: loop header
LB: loop body
LE: loop exit
PB: predicated region body
PF: predicated region fallthrough
CT: control target
= control target key end

     0   :  { %s2307_s0 = inlined_call_operand.vmem [shape: f32[2,8,32], index: 0, kind: input, shape index: {}]   ;;  %s2308_s1 = inlined_call_operand.vmem [shape: f32[2,8,32], index: 1, kind: input, shape index: {}]   ;;  %s2309_s2 = inlined_call_operand.vmem [shape: f32[2,8,32], index: 2, kind: input, shape index: {}]   ;;  %s2310_s3 = inlined_call_operand.vmem [shape: f32[32,32], index: 3, kind: input, shape index: {}]   ;;  %s2311_s4 = inlined_call_operand.vmem [shape: f32[1,32], index: 4, kind: input, shape index: {}]   ;;  %s2312_s5 = inlined_call_operand.hbm [shape: f32[2,3,32,32], index: 5, kind: input, shape index: {}]   ;;  %s2313_s6 = inlined_call_operand.hbm [shape: f32[2,3,32,32], index: 6, kind: input, shape index: {}]   ;;  %s2314_s7 = inlined_call_operand.vmem [shape: f32[2,1,32], index: 7, kind: input, shape index: {}]   ;;  %s2315_s8 = inlined_call_operand.vmem [shape: f32[2,1,32], index: 8, kind: input, shape index: {}]   ;;  %s2316_s9 = inlined_call_operand.vmem [shape: f32[32,32], index: 9, kind: input, shape index: {}]   ;;  %s2317_s10 = inlined_call_operand.vmem [shape: f32[1,32], index: 10, kind: input, shape index: {}]   ;;  %s2318_s11 = inlined_call_operand.vmem [shape: f32[32,32], index: 11, kind: input, shape index: {}]   ;;  %s2319_s12 = inlined_call_operand.vmem [shape: f32[1,32], index: 12, kind: input, shape index: {}]   ;;  %s2320_s13 = inlined_call_operand.vmem [shape: f32[32,32], index: 13, kind: input, shape index: {}]   ;;  %s2321_s14 = inlined_call_operand.vmem [shape: f32[1,32], index: 14, kind: input, shape index: {}]   ;;  %s2322_s15 = inlined_call_operand.vmem [shape: f32[32,128], index: 15, kind: input, shape index: {}]   ;;  %s2323_s16 = inlined_call_operand.vmem [shape: f32[1,128], index: 16, kind: input, shape index: {}]   ;;  %s2324_s17 = inlined_call_operand.hbm [shape: f32[2,8,128], index: 17, kind: output, shape index: {0}]   ;;  %s2325_s18 = inlined_call_operand.hbm [shape: f32[2,8,8], index: 18, kind: output, shape index: {1}]  }
   0x1   :  { %2333 = sst [smem:[#allocation21_spill]] %s2307_s0 }
   0x2   :  { %2334 = sst [smem:[#allocation22_spill]] %s2308_s1 }
   0x3   :  { %2335 = sst [smem:[#allocation23_spill]] %s2309_s2 }
   0x4   :  { %2336 = sst [smem:[#allocation24_spill]] %s2310_s3 }
   0x5   :  { %2337 = sst [smem:[#allocation25_spill]] %s2311_s4 }
   0x6   :  { %2338 = sst [smem:[#allocation26_spill]] %s2312_s5 }
   0x7   :  { %24 = vsyncpa [#allocation4], 0 }
   0x8   :  { %25 = vsyncpa [#allocation7], 0 }
   0x9   :  { %26 = vsyncpa [#allocation5], 0 }
   0xa   :  { %28 = vsyncpa [#allocation5 + $0x1], 0 }
   0xb   :  { %29 = vsyncpa [#allocation10], 0 }
   0xc   :  { %31 = vsyncpa [#allocation10 + $0x1], 0  ;;  %s1970_s27 = smov 0   ;;  %s1972_s28 = smov 0  }
   0xd   :  { %s1974_s29 = smov 0   ;;  %s1976_s30 = smov 0  }
   0xe LB: > { %2339 = sst [smem:[#allocation15_spill]] %s1856_s27  ;;  %s1991_s0 = sadd.s32 4294967295, %s1868_s30   ;;  %s1868_s30 = sphi %s1976_s30, %s2358_s30   ;;  %s1864_s29 = sphi %s1974_s29, %s2360_s29   ;;  %s1860_s28 = sphi %s1972_s28, %s2362_s28   ;;  %s1856_s27 = sphi %s1970_s27, %s2361_s27  }
   0xf   : > { %2340 = sst [smem:[#allocation16_spill]] %s1864_s29  ;;  %s1563_s19 = sadd.s32 4294967294, %s1868_s30  }
  0x10   : > { %2341 = sst [smem:[#allocation17_spill]] %s1868_s30  ;;  %s1995_s1 = sadd.s32 1, %s1868_s30  }
  0x11   : > { %2342 = sst [smem:[#allocation18_spill]] %s1995_s1  ;;  %s416_s20 = sadd.s32 1, %s1864_s29 }
  0x12   : > { %s413_s21 = ssub.s32 %s1868_s30, %s1995_s1  ;;  %p426_p0 = scmp.ne.s32.totalorder %s1864_s29, %s1860_s28 }
  0x13   : > { %p414_p1 = scmp.eq.s32.totalorder %s413_s21, 0  ;;  %p427_p2 = scmp.eq.s32.totalorder %s1991_s0, 1 }
  0x14   : > { %p432_p3 = scmp.ne.s32.totalorder %s1860_s28, %s1856_s27  ;;  %p433_p4 = scmp.eq.s32.totalorder %s1563_s19, 1 }
  0x15   : > { %s2006_s22 = scalar_select %p414_p1, %s1864_s29, %s416_s20  }
  0x16   : > { %p2008_p5 = por %p427_p2, %p426_p0  ;;  %p2012_p6 = por %p433_p4, %p432_p3 }
  0x17   : > { %2343 = sst [smem:[#allocation19_spill]] %s2006_s22  ;;  %p1564_p7 = scmp.ge.s32.totalorder %s1868_s30, 1 }
  0x18   : > { %s2345_s23 = scalar_select %p2012_p6, 1, 0 }
  0x19   : > { %p466_p8 = scmp.lt.s32.totalorder %s1868_s30, 3  ;;  %p1637_p9 = scmp.eq.s32.totalorder %s1991_s0, 0 }
  0x1a   : > { %2346 = sst [smem:[#allocation20_spill]] %s2345_s23  ;;  %s1870_s20 = smov [#allocation3]  }
  0x1b   : > { %p2019_p10 = pnand %p1564_p7, %p466_p8  ;;  %s2348_s5 = sld [smem:[#allocation26_spill]] }
  0x1c   : > { %s485_s21 = sshll.u32 %s1870_s20, 4  ;;  %s497_s1 = sshll.u32 %s2313_s6, 4  ;;  %s486_s21 = int_to_ptr.vmem [resolvable:$true] %s485_s21  ;;  %s498_s1 = int_to_ptr.hbm [resolvable:$true] %s497_s1 }
  0x1d   : > { %p1623_p11 = pneg %p2019_p10  ;;  %s1871_s23 = smov 128  }
  0x1e   : > { %s1872_s27 = smov 8   ;;  %s1873_s30 = smov [#allocation6]  }
  0x1f   : > { %p1624_p12 = pnand %p1637_p9, %p1623_p11  ;;  %s499_s25 = sshll.u32 %s1873_s30, 4  ;;  %s500_s25 = int_to_ptr.vmem [resolvable:$true] %s499_s25 }
  0x20   : > { %566 = sbr.rel (%p2019_p10) target bundleno = 2379 (0x94b), region = 88 }
  0x21   : > { %s483_s19 = sshll.u32 %s2348_s5, 4  ;;  %s484_s19 = int_to_ptr.hbm [resolvable:$true] %s483_s19 }
  0x22   : > { %1626 = dma.hbm_to_vmem [thread:$0]  (!%p1624_p12), %s484_s19, 3072, %s486_s21, [#allocation4], %s1871_s23, %s1871_s23, %s1872_s27  }
  0x23   : > { %1629 = dma.hbm_to_vmem [thread:$0]  (!%p1624_p12), %s498_s1, 3072, %s500_s25, [#allocation7], %s1871_s23, %s1871_s23, %s1872_s27  }
  0x25   : > { %1839 = dma.done.wait (%p1637_p9), [#allocation4], 3072  }
  0x26   : > { %1841 = vsyncadd (%p1637_p9), [#allocation4], 4294964224 }
  0x27   : > { %1843 = dma.done.wait (%p1637_p9), [#allocation7], 3072  }
  0x28   : > { %1845 = vsyncadd (%p1637_p9), [#allocation7], 4294964224  ;;  %p638_p13 = scmp.lt.s32.totalorder %s1991_s0, 1  ;;  %s2349_s3 = sld [smem:[#allocation24_spill]]  ;;  %vm661_vm0 = vcmask 261120   ;;  %vm710_vm1 = vcmask 254976  }
  0x29   : > { %v1874_v5 = vmov 1.0   ;;  %v692_v6 = vld [vmem:[#allocation3 + $0x38] sm:$0xff]  ;;  %v691_v10 = vld [vmem:[#allocation3 + $0x30] sm:$0xff]  ;;  %v690_v14 = vld [vmem:[#allocation3 + $0x28] sm:$0xff]  ;;  %s2351_s4 = sld [smem:[#allocation25_spill]]  ;;  %vm936_vm6 = vcmask 64512  }
  0x2a   : > { %s639_s29 = scalar_select %p638_p13, %s1991_s0, 1  ;;  %709 = vst.msk [vmem:[#allocation2] sm:$0xff] %vm661_vm0, %v1874_v5  ;;  %v688_v7 = vld [vmem:[#allocation3 + $0x18] sm:$0xff]  ;;  %730 = vmatpush.msra.mxu1 %v692_v6  ;;  %v687_v11 = vld [vmem:[#allocation3 + $0x10] sm:$0xff]  ;;  %v686_v15 = vld [vmem:[#allocation3 + $0x8] sm:$0xff] }
  0x2b   : > { %711 = vst.msk [vmem:[#allocation2 + $0x8] sm:$0x3] %vm710_vm1, %v1874_v5  ;;  %v704_v8 = vld [vmem:[#allocation6 + $0x38] sm:$0xff]  ;;  %753 = vmatpush.msra.mxu2 %v688_v7  ;;  %v703_v12 = vld [vmem:[#allocation6 + $0x30] sm:$0xff]  ;;  %v702_v16 = vld [vmem:[#allocation6 + $0x28] sm:$0xff]  ;;  %s2352_s1 = sld [smem:[#allocation22_spill]] }
  0x2c   : > { %s2045_s27 = sshll.u32 %s639_s29, 3  ;;  %s2350_s29 = sld [smem:[#allocation21_spill]]  ;;  %v700_v9 = vld [vmem:[#allocation6 + $0x18] sm:$0xff]  ;;  %773 = vmatpush.msra.mxu3 %v704_v8  ;;  %v699_v13 = vld [vmem:[#allocation6 + $0x10] sm:$0xff]  ;;  %731 = vmatpush.msra.mxu1 %v691_v10  ;;  %v698_v17 = vld [vmem:[#allocation6 + $0x8] sm:$0xff] }
  0x2d   : > { %754 = vmatpush.msra.mxu2 %v687_v11  ;;  %v689_v18 = vld [vmem:[#allocation3 + $0x20] sm:$0xff]  ;;  %v708_v22 = vld [vmem:[#allocation6 + $0x58] sm:$0xff]  ;;  %v707_v24 = vld [vmem:[#allocation6 + $0x50] sm:$0xff]  ;;  %s2353_s25 = sld [smem:[#allocation23_spill]] }
  0x2e   : > { %v656_v0 = vld [vmem:[%s2349_s3 + $0x18] sm:$0xff]  ;;  %v655_v1 = vld [vmem:[%s2349_s3 + $0x10] sm:$0xff]  ;;  %v654_v2 = vld [vmem:[%s2349_s3 + $0x8] sm:$0xff]  ;;  %774 = vmatpush.msra.mxu3 %v703_v12  ;;  %732 = vmatpush.msra.mxu1 %v690_v14 }
  0x2f   : > { %677 = vmatpush.msra.mxu0 %v656_v0  ;;  %v653_v3 = vld [vmem:[%s2349_s3] sm:$0xff]  ;;  %v685_v19 = vld [vmem:[#allocation3] sm:$0xff]  ;;  %755 = vmatpush.msra.mxu2 %v686_v15  ;;  %v696_v23 = vld [vmem:[#allocation3 + $0x58] sm:$0xff] }
  0x30   : > { %v701_v20 = vld [vmem:[#allocation6 + $0x20] sm:$0xff]  ;;  %775 = vmatpush.msra.mxu3 %v702_v16  ;;  %733 = vmatpush.msra.mxu1 %v689_v18  ;;  %v695_v25 = vld [vmem:[#allocation3 + $0x50] sm:$0xff]  ;;  %v706_v26 = vld [vmem:[#allocation6 + $0x48] sm:$0xff] }
  0x31   : > { %678 = vmatpush.msra.mxu0 %v655_v1  ;;  %v697_v21 = vld [vmem:[#allocation6] sm:$0xff]  ;;  %756 = vmatpush.msra.mxu2 %v685_v19  ;;  %v694_v27 = vld [vmem:[#allocation3 + $0x48] sm:$0xff]  ;;  %v1679_v30 = vld [vmem:[%s2351_s4] ss:$0 sm:$0xff]  ;;  %s645_s22 = scalar_lea.vmem %s2352_s1, %s2045_s27 }
  0x32   : > { %s641_s5 = scalar_lea.vmem %s2350_s29, %s2045_s27  ;;  %776 = vmatpush.msra.mxu3 %v701_v20  ;;  %817 = vmatpush.msrb.mxu1 %v696_v23  ;;  %v705_v28 = vld [vmem:[#allocation6 + $0x40] sm:$0xff]  ;;  %v2091_v37 = vld [vmem:[%s2316_s9 + $0x18] sm:$0xff]  ;;  %v2102_v39 = vld [vmem:[%s2316_s9 + $0x8] sm:$0xff] }
  0x33   : > { %679 = vmatpush.msra.mxu0 %v654_v2  ;;  %v2063_v4 = vld [vmem:[%s641_s5] sm:$0xff]  ;;  %838 = vmatpush.msrb.mxu2 %v708_v22  ;;  %v693_v29 = vld [vmem:[#allocation3 + $0x40] sm:$0xff]  ;;  %s649_s29 = scalar_lea.vmem %s2353_s25, %s2045_s27  ;;  %v2147_v19 = vld [vmem:[%s2318_s11 + $0x18] sm:$0xff]  ;;  %s1607_s27 = sshll.u32 %s1991_s0, 3 }
  0x34   : > { %818 = vmatpush.msrb.mxu1 %v695_v25  ;;  %v2096_v38 = vld [vmem:[%s2316_s9 + $0x10] sm:$0xff]  ;;  %900 = vmatpush.msrb.mxu3 %v2091_v37  ;;  %v2108_v41 = vld [vmem:[%s2316_s9] sm:$0xff]  ;;  %s1420_s20 = scalar_lea.hbm %s2325_s18, %s1607_s27  ;;  %s1786_s0 = scalar_lea.hbm %s2325_s18, 16 }
  0x35   : > { %680 = vmatpush.msra.mxu0 %v653_v3  ;;  %839 = vmatpush.msrb.mxu2 %v707_v24  ;;  %v1681_v44 = vld [vmem:[%s2315_s8] ss:$0 sm:$0xff]  ;;  %v2152_v20 = vld [vmem:[%s2318_s11 + $0x10] sm:$0xff]  ;;  %s1424_s25 = sshll.u32 %s1420_s20, 4  ;;  %s1425_s25 = int_to_ptr.hbm [resolvable:$true] %s1424_s25 }
  0x36   : > { %1576 = vmatmul.msk.f32.vlgmr.msra.gmra.mxu0 %vm661_vm0, %v2063_v4  ;;  %819 = vmatpush.msrb.mxu1 %v694_v27  ;;  %v2119_v48 = vld [vmem:[%s645_s22] sm:$0xff]  ;;  %v1010_v27 = vld [vmem:[#allocation3 + $0x78] sm:$0xff]  ;;  %s2211_s22 = sand.u32 1, %s1860_s28   ;;  %s1780_s5 = sshra.s32 %s1425_s25, 4  ;;  %s1781_s5 = int_to_ptr.hbm [resolvable:$true] %s1780_s5 }
  0x37   : > { %793 = vmatpush.msrb.mxu0 %v700_v9  ;;  %840 = vmatpush.msrb.mxu2 %v706_v26  ;;  %v1680_v60 = vld [vmem:[%s2314_s7] ss:$0 sm:$0xff]  ;;  %s2332_s23 = sshll.u32 %s2211_s22, 3  ;;  %p1787_p3 = scmp.lt.s32.totalorder %s1781_s5, %s2325_s18 }
  0x38   : > { %820 = vmatpush.msrb.mxu1 %v693_v29  ;;  %901 = vmatpush.msrb.mxu3 %v2096_v38  ;;  %v1682_v6 = vld [vmem:[%s2317_s10] ss:$0 sm:$0xff]  ;;  %v1014_v29 = vld [vmem:[#allocation3 + $0x98] sm:$0xff]  ;;  %s2217_s24 = scalar_lea.vmem [#allocation9], %s2332_s23  ;;  %s1782_s23 = scalar_lea.hbm %s1781_s5, 8 }
  0x39   : > { %794 = vmatpush.msrb.mxu0 %v699_v13  ;;  %841 = vmatpush.msrb.mxu2 %v705_v28  ;;  %v2141_v18 = vld [vmem:[%s649_s29] sm:$0xff]  ;;  %v1023_v28 = vld [vmem:[#allocation6 + $0x78] sm:$0xff]  ;;  %s1422_s21 = sshll.u32 %s2217_s24, 4  ;;  %s1396_s29 = scalar_lea.sflag [#allocation10], %s2211_s22  ;;  %s1423_s21 = int_to_ptr.vmem [resolvable:$true] %s1422_s21 }
  0x3a   : > { %902 = vmatpush.msrb.mxu3 %v2102_v39  ;;  %v2164_v22 = vld [vmem:[%s2318_s11] sm:$0xff]  ;;  %p1783_p0 = scmp.ne.s32.totalorder %s1781_s5, %s1782_s23  ;;  %p1788_p4 = scmp.lt.s32.totalorder %s1786_s0, %s1782_s23 }
  0x3b   : > { %795 = vmatpush.msrb.mxu0 %v698_v17 }
  0x3c   : > { %903 = vmatpush.msrb.mxu3 %v2108_v41  ;;  %p1784_p1 = pnand %p1783_p0, %p2008_p5  ;;  %p1789_p7 = por %p1788_p4, %p1787_p3 }
  0x3d   : > { %796 = vmatpush.msrb.mxu0 %v697_v21  ;;  %v2158_v21 = vld [vmem:[%s2318_s11 + $0x8] sm:$0xff] }
  0x3e   : > { %p1785_p2 = pneg %p1784_p1 }
  0x3f   : > { %1585 = vmatpush.xpose.msk.msra.mxu0 %vm661_vm0, %v2119_v48 }
  0x40   : > { %p1790_p8 = pnand %p1789_p7, %p1785_p2 }
  0xb3   : > { %v682_v31 = vpop.f32.mrf.mxu0 }
  0xb4   : > { %v2074_v32 = vadd.f32 %v1679_v30, %v682_v31  ;;  %v1027_v30 = vld [vmem:[#allocation6 + $0x98] sm:$0xff]  ;;  %v1009_v31 = vld [vmem:[#allocation3 + $0x70] sm:$0xff] }
  0xb6   : > { %712 = vst.msk [vmem:[#allocation2 + $0x2] sm:$0xff] %vm661_vm0, %v2074_v32 }
  0xbd   : > { %v714_v33 = vld [vmem:[#allocation2 + $0x1] sm:$0xff] }
  0xbe   : > { %v713_v34 = vld [vmem:[#allocation2] sm:$0xff]  ;;  %1577 = vmatmul.msk.f32.vlgmr.msra.gmra.mxu1 %vm661_vm0, %v714_v33  ;;  %1579 = vmatmul.msk.f32.vlgmr.msra.gmra.mxu3 %vm661_vm0, %v714_v33 }
  0xbf   : > { %v801_v35 = vld [vmem:[#allocation2 + $0x2] sm:$0xff]  ;;  %1578 = vmatmul.msk.f32.vlgmr.msra.gmra.mxu2 %vm661_vm0, %v713_v34  ;;  %1580 = vmatmul.msk.f32.vlgmr.msrb.gmra.mxu0 %vm661_vm0, %v713_v34 }
  0xc0   : > { %1032 = vst.msk [vmem:[#allocation2] sm:$0xff] %vm661_vm0, %v1874_v5  ;;  %966 = vmatpush.msra.mxu1 %v2141_v18  ;;  %994 = vmatpush.msra.mxu2 %v2147_v19  ;;  %v1022_v33 = vld [vmem:[#allocation6 + $0x70] sm:$0xff] }
  0xc1   : > { %1033 = vst.msk [vmem:[#allocation2 + $0x8] sm:$0x3] %vm710_vm1, %v1874_v5  ;;  %1075 = vmatpush.msrb.mxu0 %v1010_v27  ;;  %1052 = vmatpush.msra.mxu3 %v1014_v29  ;;  %v1013_v34 = vld [vmem:[#allocation3 + $0x90] sm:$0xff] }
  0xc2   : > { %995 = vmatpush.msra.mxu2 %v2152_v20 }
  0xc3   : > { %1076 = vmatpush.msrb.mxu0 %v1009_v31  ;;  %1053 = vmatpush.msra.mxu3 %v1013_v34 }
  0xc4   : > { %996 = vmatpush.msra.mxu2 %v2158_v21 }
  0xc6   : > { %1581 = vmatmul.msk.f32.vlgmr.msrb.gmra.mxu1 %vm661_vm0, %v801_v35  ;;  %997 = vmatpush.msra.mxu2 %v2164_v22 }
  0xc7   : > { %1582 = vmatmul.msk.f32.vlgmr.msrb.gmra.mxu2 %vm661_vm0, %v801_v35  ;;  %1095 = vmatpush.msrb.mxu1 %v1027_v30  ;;  %v1026_v35 = vld [vmem:[#allocation6 + $0x90] sm:$0xff] }
  0xc8   : > { %1115 = vmatpush.msrb.mxu2 %v1023_v28 }
  0xc9   : > { %1096 = vmatpush.msrb.mxu1 %v1026_v35 }
  0xca   : > { %1116 = vmatpush.msrb.mxu2 %v1022_v33 }
 0x13b   : > { %v735_v51 = vpop.f32.mrf.mxu1 }
 0x13c   : > { %v798_v42 = vpop.f32.mrf.mxu0 }
 0x141   : > { %v778_v40 = vpop.f32.mrf.mxu3 }
 0x142   : > { %v758_v36 = vpop.f32.mrf.mxu2  ;;  %v799_v43 = vadd.f32 %v798_v42, %v778_v40  ;;  %v1021_v40 = vld [vmem:[#allocation6 + $0x68] sm:$0xff] }
 0x143   : > { %v759_v54 = vadd.f32 %v758_v36, %v735_v51  ;;  %v822_v56 = vpop.f32.mrf.mxu1  ;;  %v1008_v36 = vld [vmem:[#allocation3 + $0x68] sm:$0xff]  ;;  %1117 = vmatpush.msrb.mxu2 %v1021_v40  ;;  %v1030_v51 = vld [vmem:[#allocation6 + $0xb0] sm:$0xff] }
 0x144   : > { %v1012_v42 = vld [vmem:[#allocation3 + $0x88] sm:$0xff]  ;;  %1077 = vmatpush.msrb.mxu0 %v1008_v36 }
 0x145   : > { %v825_v59 = vadd.f32 %v822_v56, %v759_v54  ;;  %1054 = vmatpush.msra.mxu3 %v1012_v42  ;;  %v1016_v54 = vld [vmem:[#allocation3 + $0xa8] sm:$0xff]  ;;  %v1015_v56 = vld [vmem:[#allocation3 + $0xa0] sm:$0xff] }
 0x147   : > { %v851_v1 = vadd.f32 %v1680_v60, %v825_v59 }
 0x14a   : > { %v843_v45 = vpop.f32.mrf.mxu2 }
 0x14b   : > { %v846_v46 = vadd.f32 %v843_v45, %v799_v43  ;;  %v1025_v43 = vld [vmem:[#allocation6 + $0x88] sm:$0xff]  ;;  %v1020_v45 = vld [vmem:[#allocation6 + $0x60] sm:$0xff] }
 0x14c   : > { %1097 = vmatpush.msrb.mxu1 %v1025_v43  ;;  %1118 = vmatpush.msrb.mxu2 %v1020_v45 }
 0x14d   : > { %v856_v47 = vadd.f32 %v1681_v44, %v846_v46  ;;  %v1007_v44 = vld [vmem:[#allocation3 + $0x60] sm:$0xff] }
 0x14e   : > { %v1011_v46 = vld [vmem:[#allocation3 + $0x80] sm:$0xff]  ;;  %1078 = vmatpush.msrb.mxu0 %v1007_v44 }
 0x14f   : > { %v1583_v49 = vmul.f32 -1.442695, %v856_v47  ;;  %v1024_v47 = vld [vmem:[#allocation6 + $0x80] sm:$0xff]  ;;  %1055 = vmatpush.msra.mxu3 %v1011_v46  ;;  %v1330_v46 = vld [vmem:[%s2320_s13 + $0x18] sm:$0xff] }
 0x150   : > { %1098 = vmatpush.msrb.mxu1 %v1024_v47  ;;  %v1329_v47 = vld [vmem:[%s2320_s13 + $0x10] sm:$0xff] }
 0x151   : > { %1690 = vpow2.f32 %v1583_v49  ;;  %v1031_v49 = vld [vmem:[#allocation6 + $0xb8] sm:$0xff] }
 0x157   : > { %v1691_v50 = vpop.eup %1690 }
 0x158   : > { %v860_v52 = vadd.f32 1.0, %v1691_v50  ;;  %v1018_v50 = vld [vmem:[#allocation3 + $0xb8] sm:$0xff] }
 0x15a   : > { %1692 = vrcp.f32 %v860_v52  ;;  %v872_v58 = vand.u32 2147483648, %v860_v52  ;;  %v870_v62 = vand.u32 2147483647, %v860_v52  ;;  %vm866_vm3 = vweird.f32 %v860_v52 }
 0x15c   : > { %v873_v0 = vor.u32 1.1754944e-38, %v872_v58  ;;  %vm871_vm5 = vcmp.eq.f32.partialorder %v870_v62, 8.507059e+37 }
 0x160   : > { %v1693_v53 = vpop.eup %1692 }
 0x161   : > { %v862_v55 = vmul.f32 %v1693_v53, %v860_v52  ;;  %vm867_vm2 = vweird.f32 %v1693_v53  ;;  %v1017_v52 = vld [vmem:[#allocation3 + $0xb0] sm:$0xff] }
 0x162   : > { %vm868_vm4 = vmor %vm866_vm3, %vm867_vm2 }
 0x163   : > { %v863_v57 = vsub.f32 1.0, %v862_v55  ;;  %v1028_v55 = vld [vmem:[#allocation6 + $0xa0] sm:$0xff] }
 0x165   : > { %v864_v61 = vmul.f32 %v1693_v53, %v863_v57 }
 0x167   : > { %v865_v63 = vadd.f32 %v1693_v53, %v864_v61 }
 0x169   : > { %v869_v2 = vsel %vm868_vm4, %v1693_v53, %v865_v63  ;;  %v1029_v53 = vld [vmem:[#allocation6 + $0xa8] sm:$0xff] }
 0x16a   : > { %v874_v3 = vsel %vm871_vm5, %v873_v0, %v869_v2  ;;  %v1684_v2 = vld [vmem:[%s2315_s8 + $0x1] ss:$0 sm:$0xff] }
 0x16b   : > { %v2126_v5 = vmul.f32 %v874_v3, %v851_v1 }
 0x16d   : > { %1584 = vmatmul.msk.f32.vlgmr.msrb.gmra.mxu3 %vm661_vm0, %v2126_v5 }
 0x16e   : > { %1139 = vmatpush.msrb.mxu3 %v1018_v50  ;;  %v1327_v50 = vld [vmem:[%s2320_s13] sm:$0xff] }
 0x170   : > { %1140 = vmatpush.msrb.mxu3 %v1017_v52  ;;  %v1360_v52 = vld [vmem:[%s2322_s15 + $0x10] sm:$0xff] }
 0x172   : > { %1141 = vmatpush.msrb.mxu3 %v1016_v54  ;;  %v1687_v54 = vld [vmem:[%s2319_s12] ss:$0 sm:$0xff] }
 0x174   : > { %1142 = vmatpush.msrb.mxu3 %v1015_v56 }
 0x1f0   : > { %v905_v7 = vpop.f32.mrf.mxu3 }
 0x1f1   : > { %v906_v8 = vadd.f32 %v1682_v6, %v905_v7 }
 0x1f3   : > { %v908_v9 = vadd.f32 %v906_v8, %v2063_v4 }
 0x1f5   : > { %v909_v10 = vmul.f32 0.70710677, %v908_v9 }
 0x1f7   : > { %1586 = vmatmul.msk.f32.vlgmr.msra.gmra.mxu0 %vm661_vm0, %v909_v10 }
 0x1f8   : > { %1160 = vmatpush.msra.mxu0 %v1031_v49  ;;  %v1328_v49 = vld [vmem:[%s2320_s13 + $0x8] sm:$0xff] }
 0x1fa   : > { %1161 = vmatpush.msra.mxu0 %v1030_v51  ;;  %v1361_v51 = vld [vmem:[%s2322_s15 + $0x18] sm:$0xff] }
 0x1fc   : > { %1162 = vmatpush.msra.mxu0 %v1029_v53  ;;  %v1359_v53 = vld [vmem:[%s2322_s15 + $0x8] sm:$0xff] }
 0x1fe   : > { %1163 = vmatpush.msra.mxu0 %v1028_v55 }
 0x274   : > { %v933_v11 = vpop.f32.mrf.mxu0 }
 0x275   : > { %v937_v12 = vsel %vm936_vm6, %v933_v11, -inf }
 0x276   : > { %938 = vmax.xlane.f32.xlu0 %v937_v12 }
 0x2e9   : > { %v939_v13 = vpop.xlane.xlu0 %938 }
 0x2ea   : > { %v940_v14 = vsub.f32 %v933_v11, %v939_v13 }
 0x2ec   : > { %v941_v15 = vmul.f32 1.442695, %v940_v14 }
 0x2ee   : > { %1694 = vpow2.f32 %v941_v15 }
 0x2f4   : > { %v1695_v16 = vpop.eup %1694 }
 0x2f5   : > { %v943_v17 = vsel %vm936_vm6, %v1695_v16, 0.0 }
 0x2f6   : > { %944 = vadd.xlane.f32.xlu0 %v943_v17  ;;  %v1685_v17 = vld [vmem:[%s2314_s7 + $0x1] ss:$0 sm:$0xff] }
 0x369   : > { %v945_v23 = vpop.xlane.xlu0 %944 }
 0x36a   : > { %1696 = vrcp.f32 %v945_v23 }
 0x370   : > { %v1697_v24 = vpop.eup %1696 }
 0x371   : > { %v947_v25 = vmul.f32 %v1697_v24, %v1695_v16 }
 0x373   : > { %1587 = vmatmul.msk.f32.vlgmr.msra.gmra.mxu1 %vm936_vm6, %v947_v25 }
 0x374   : > { %1224 = vmatpush.msra.mxu1 %v2091_v37  ;;  %v1683_v37 = vld [vmem:[%s2319_s12] ss:$0 sm:$0xff] }
 0x376   : > { %1225 = vmatpush.msra.mxu1 %v2096_v38 }
 0x378   : > { %1226 = vmatpush.msra.mxu1 %v2102_v39 }
 0x37a   : > { %1227 = vmatpush.msra.mxu1 %v2108_v41 }
 0x3f0   : > { %v968_v26 = vpop.f32.mrf.mxu1 }
 0x3f1   : > { %1588 = vmatmul.msk.f32.vlgmr.msra.gmra.mxu2 %vm661_vm0, %v968_v26  ;;  %v1686_v26 = vld [vmem:[%s2317_s10] ss:$0 sm:$0xff] }
 0x3f2   : > { %1599 = vmatpush.xpose.msk.msra.mxu2 %vm661_vm0, %v2119_v48 }
 0x474   : > { %v999_v48 = vpop.f32.mrf.mxu2 }
 0x475   : > { %v1000_v57 = vadd.f32 %v1683_v37, %v999_v48 }
 0x477   : > { %v1002_v38 = vadd.f32 %v1000_v57, %v2126_v5 }
 0x479   : > { %v1003_v58 = vmul.f32 0.70710677, %v1002_v38 }
 0x47b   : > { %v1004_v59 = vadd.f32 %v1003_v58, %v2074_v32  ;;  %v1358_v58 = vld [vmem:[%s2322_s15] sm:$0xff] }
 0x47d   : > { %v2181_v60 = vmul.f32 0.70710677, %v1004_v59  ;;  %v1688_v59 = vld [vmem:[%s2321_s14] ss:$0 sm:$0xff] }
 0x47f   : > { %1034 = vst.msk [vmem:[#allocation2 + $0x2] sm:$0xff] %vm661_vm0, %v2181_v60 }
 0x486   : > { %v1036_v39 = vld [vmem:[#allocation2 + $0x1] sm:$0xff] }
 0x487   : > { %v1035_v41 = vld [vmem:[#allocation2] sm:$0xff]  ;;  %1589 = vmatmul.msk.f32.vlgmr.msra.gmra.mxu3 %vm661_vm0, %v1036_v39  ;;  %1591 = vmatmul.msk.f32.vlgmr.msrb.gmra.mxu1 %vm661_vm0, %v1036_v39 }
 0x488   : > { %1590 = vmatmul.msk.f32.vlgmr.msrb.gmra.mxu0 %vm661_vm0, %v1035_v41  ;;  %1592 = vmatmul.msk.f32.vlgmr.msrb.gmra.mxu2 %vm661_vm0, %v1035_v41  ;;  %v1123_v32 = vld [vmem:[#allocation2 + $0x2] sm:$0xff] }
 0x489   : > { %1286 = vmatpush.msra.mxu3 %v2141_v18  ;;  %1314 = vmatpush.msrb.mxu0 %v2147_v19 }
 0x48a   : > { %1350 = vmatpush.msrb.mxu1 %v1330_v46  ;;  %1381 = vmatpush.msrb.mxu2 %v1361_v51 }
 0x48b   : > { %1315 = vmatpush.msrb.mxu0 %v2152_v20 }
 0x48c   : > { %1351 = vmatpush.msrb.mxu1 %v1329_v47  ;;  %1382 = vmatpush.msrb.mxu2 %v1360_v52 }
 0x48d   : > { %1316 = vmatpush.msrb.mxu0 %v2158_v21 }
 0x48e   : > { %1352 = vmatpush.msrb.mxu1 %v1328_v49  ;;  %1383 = vmatpush.msrb.mxu2 %v1359_v53 }
 0x48f   : > { %1593 = vmatmul.msk.f32.vlgmr.msrb.gmra.mxu3 %vm661_vm0, %v1123_v32  ;;  %1317 = vmatpush.msrb.mxu0 %v2164_v22 }
 0x490   : > { %1594 = vmatmul.msk.f32.vlgmr.msra.gmra.mxu0 %vm661_vm0, %v1123_v32  ;;  %1353 = vmatpush.msrb.mxu1 %v1327_v50 }
 0x491   : > { %1384 = vmatpush.msrb.mxu2 %v1358_v58 }
 0x504   : > { %v1100_v62 = vpop.f32.mrf.mxu1 }
 0x505   : > { %v1080_v61 = vpop.f32.mrf.mxu0 }
 0x50a   : > { %v1057_v8 = vpop.f32.mrf.mxu3 }
 0x50b   : > { %v1120_v63 = vpop.f32.mrf.mxu2  ;;  %v1081_v13 = vadd.f32 %v1080_v61, %v1057_v8 }
 0x50c   : > { %v1121_v0 = vadd.f32 %v1120_v63, %v1100_v62 }
 0x50d   : > { %v1165_v1 = vpop.f32.mrf.mxu0 }
 0x50e   : > { %v1168_v3 = vadd.f32 %v1165_v1, %v1121_v0 }
 0x510   : > { %v1180_v5 = vadd.f32 %v1684_v2, %v1168_v3 }
 0x512   : > { %v1597_v6 = vmul.f32 -1.442695, %v1180_v5  ;;  %v1144_v12 = vpop.f32.mrf.mxu3 }
 0x513   : > { %v1147_v16 = vadd.f32 %v1144_v12, %v1081_v13 }
 0x514   : > { %1698 = vpow2.f32 %v1597_v6 }
 0x515   : > { %v1174_v22 = vadd.f32 %v1685_v17, %v1147_v16 }
 0x51a   : > { %v1699_v7 = vpop.eup %1698 }
 0x51b   : > { %v1184_v9 = vadd.f32 1.0, %v1699_v7 }
 0x51d   : > { %1700 = vrcp.f32 %v1184_v9  ;;  %v1196_v15 = vand.u32 2147483648, %v1184_v9  ;;  %v1194_v19 = vand.u32 2147483647, %v1184_v9  ;;  %vm1190_vm8 = vweird.f32 %v1184_v9 }
 0x51f   : > { %v1197_v21 = vor.u32 1.1754944e-38, %v1196_v15  ;;  %vm1195_vm10 = vcmp.eq.f32.partialorder %v1194_v19, 8.507059e+37 }
 0x523   : > { %v1701_v10 = vpop.eup %1700 }
 0x524   : > { %v1186_v11 = vmul.f32 %v1701_v10, %v1184_v9  ;;  %vm1191_vm7 = vweird.f32 %v1701_v10 }
 0x525   : > { %vm1192_vm9 = vmor %vm1190_vm8, %vm1191_vm7 }
 0x526   : > { %v1187_v14 = vsub.f32 1.0, %v1186_v11 }
 0x528   : > { %v1188_v18 = vmul.f32 %v1701_v10, %v1187_v14 }
 0x52a   : > { %v1189_v20 = vadd.f32 %v1701_v10, %v1188_v18 }
 0x52c   : > { %v1193_v23 = vsel %vm1192_vm9, %v1701_v10, %v1189_v20 }
 0x52d   : > { %v1198_v24 = vsel %vm1195_vm10, %v1197_v21, %v1193_v23 }
 0x52e   : > { %v1200_v25 = vmul.f32 %v1198_v24, %v1174_v22 }
 0x530   : > { %1598 = vmatmul.msk.f32.vlgmr.msra.gmra.mxu1 %vm661_vm0, %v1200_v25 }
 0x5ad   : > { %v1229_v27 = vpop.f32.mrf.mxu1 }
 0x5ae   : > { %v1230_v28 = vadd.f32 %v1686_v26, %v1229_v27 }
 0x5b0   : > { %v1232_v29 = vadd.f32 %v1230_v28, %v2063_v4 }
 0x5b2   : > { %v1233_v30 = vmul.f32 0.70710677, %v1232_v29 }
 0x5b4   : > { %1600 = vmatmul.msk.f32.vlgmr.msra.gmra.mxu2 %vm661_vm0, %v1233_v30 }
 0x637   : > { %v1254_v31 = vpop.f32.mrf.mxu2 }
 0x638   : > { %v1257_v33 = vsel %vm936_vm6, %v1254_v31, -inf }
 0x639   : > { %1258 = vmax.xlane.f32.xlu1 %v1257_v33 }
 0x6ac   : > { %v1259_v34 = vpop.xlane.xlu1 %1258 }
 0x6ad   : > { %v1260_v35 = vsub.f32 %v1254_v31, %v1259_v34 }
 0x6af   : > { %v1261_v36 = vmul.f32 1.442695, %v1260_v35 }
 0x6b1   : > { %1702 = vpow2.f32 %v1261_v36 }
 0x6b7   : > { %v1703_v40 = vpop.eup %1702 }
 0x6b8   : > { %v1263_v42 = vsel %vm936_vm6, %v1703_v40, 0.0 }
 0x6b9   : > { %1264 = vadd.xlane.f32.xlu1 %v1263_v42 }
 0x72c   : > { %v1265_v43 = vpop.xlane.xlu1 %1264 }
 0x72d   : > { %1704 = vrcp.f32 %v1265_v43 }
 0x733   : > { %v1705_v4 = vpop.eup %1704 }
 0x734   : > { %v1267_v44 = vmul.f32 %v1705_v4, %v1703_v40 }
 0x736   : > { %1601 = vmatmul.msk.f32.vlgmr.msra.gmra.mxu3 %vm936_vm6, %v1267_v44  ;;  %1326 = vst.msk [vmem:[%s2217_s24] sm:$0xff] %vm936_vm6, %v1267_v44 }
 0x7b9   : > { %v1288_v45 = vpop.f32.mrf.mxu3 }
 0x7ba   : > { %1602 = vmatmul.msk.f32.vlgmr.msrb.gmra.mxu0 %vm661_vm0, %v1288_v45 }
 0x837   : > { %v1319_v55 = vpop.f32.mrf.mxu0 }
 0x838   : > { %v1320_v56 = vadd.f32 %v1687_v54, %v1319_v55 }
 0x83a   : > { %v1322_v37 = vadd.f32 %v1320_v56, %v1200_v25 }
 0x83c   : > { %v1323_v48 = vmul.f32 0.70710677, %v1322_v37 }
 0x83e   : > { %v1324_v57 = vadd.f32 %v1323_v48, %v2181_v60 }
 0x840   : > { %v1325_v38 = vmul.f32 0.70710677, %v1324_v57 }
 0x842   : > { %1603 = vmatmul.msk.f32.vlgmr.msrb.gmra.mxu1 %vm661_vm0, %v1325_v38 }
 0x8bf   : > { %v1355_v39 = vpop.f32.mrf.mxu1 }
 0x8c0   : > { %v1356_v41 = vadd.f32 %v1688_v59, %v1355_v39 }
 0x8c2   : > { %1604 = vmatmul.msk.f32.vlgmr.msrb.gmra.mxu2 %vm661_vm0, %v1356_v41 }
 0x8c3   : > { %1793 = shalt.err (!%p1790_p8)
}
 0x8c4   : > { %1620 = dma.vmem_to_hbm [thread:$0]  (%p2008_p5), %s1423_s21, 128, %s1425_s25, %s1396_s29   ;;  %v1689_v60 = vld [vmem:[%s2323_s16] ss:$0 sm:$0xff] }
 0x8c5   : > { %s1406_s19 = scalar_lea.hbm %s2324_s17, %s1607_s27  ;;  %s2354_s3 = sshll.u32 %s2211_s22, 3 }
 0x8c6   : > { %s630_s4 = scalar_lea.vmem [#allocation8], %s2354_s3  ;;  %s1410_s5 = sshll.u32 %s1406_s19, 4  ;;  %s1411_s5 = int_to_ptr.hbm [resolvable:$true] %s1410_s5 }
 0x8c7   : > { %s1408_s23 = sshll.u32 %s630_s4, 4  ;;  %s1391_s1 = scalar_lea.sflag [#allocation5], %s2211_s22  ;;  %s1409_s23 = int_to_ptr.vmem [resolvable:$true] %s1408_s23 }
 0x8c8   : > { %s1808_s21 = sshra.s32 %s1411_s5, 4  ;;  %s1814_s0 = scalar_lea.hbm %s2324_s17, 16  ;;  %s1809_s21 = int_to_ptr.hbm [resolvable:$true] %s1808_s21 }
 0x8c9   : > { %s1810_s25 = scalar_lea.hbm %s1809_s21, 8  ;;  %p1815_p12 = scmp.lt.s32.totalorder %s1809_s21, %s2324_s17 }
 0x8ca   : > { %p1811_p9 = scmp.ne.s32.totalorder %s1809_s21, %s1810_s25  ;;  %p1816_p13 = scmp.lt.s32.totalorder %s1814_s0, %s1810_s25 }
 0x8cc   : > { %p1812_p10 = pnand %p1811_p9, %p2008_p5  ;;  %p1817_p0 = por %p1816_p13, %p1815_p12 }
 0x8ce   : > { %p1813_p11 = pneg %p1812_p10 }
 0x8d0   : > { %p1818_p1 = pnand %p1817_p0, %p1813_p11 }
 0x945   : > { %v1386_v32 = vpop.f32.mrf.mxu2 }
 0x946   : > { %v1387_v61 = vadd.f32 %v1689_v60, %v1386_v32 }
 0x948   : > { %1389 = vst [vmem:[%s630_s4] sm:$0xff] %v1387_v61 }
 0x949   : > { %1821 = shalt.err (!%p1818_p1)
}
 0x94a   : > { %1619 = dma.vmem_to_hbm [thread:$0]  (%p2008_p5), %s1409_s23, 128, %s1411_s5, %s1391_s1  }
 0x94b PF: > { %s2355_s22 = sld [smem:[#allocation17_spill]] }
 0x94c   : > { %s2356_s19 = sld [smem:[#allocation15_spill]] }
 0x951   : > { %p1641_p2 = scmp.ge.s32.totalorder %s2355_s22, 2 }
 0x952   : > { %s1436_s30 = sand.u32 1, %s2356_s19  }
 0x953   : > { %p1631_p3 = pnand %p1641_p2, %p2012_p6  ;;  %s1437_s3 = scalar_lea.sflag [#allocation5], %s1436_s30 }
 0x955   : > { %p1632_p4 = pneg %p1631_p3 }
 0x957   : > { %1847 = dma.done.wait (%p1632_p4), %s1437_s3, 128  }
 0x958   : > { %1849 = vsyncadd (%p1632_p4), %s1437_s3, 4294967168  ;;  %s1447_s4 = scalar_lea.sflag [#allocation10], %s1436_s30 }
 0x959   : > { %1851 = dma.done.wait (%p1632_p4), %s1447_s4, 128  }
 0x95a   : > { %1853 = vsyncadd (%p1632_p4), %s1447_s4, 4294967168  ;;  %s2358_s30 = sld [smem:[#allocation18_spill]]  ;;  %s2361_s27 = smov %s1860_s28 }
 0x95b   : > { %s2359_s21 = sld [smem:[#allocation16_spill]] }
 0x95c   : > { %s2360_s29 = sld [smem:[#allocation19_spill]] }
 0x960   : > { %p34_p5 = scmp.ge.s32.totalorder %s2358_s30, 4  }
 0x961   : > { %s2362_s28 = smov %s2359_s21 }
 0x962   :  { %36 = sbr.rel (!%p34_p5) target bundleno = 14 (0xe), region = 159 }
 0x967   :  { %1453 = vsyncpa [#allocation4], 1 }
 0x968   :  { %1455 = vsyncpa [#allocation4 + $0x1], 1 }
 0x969   :  { %1456 = vsyncpa [#allocation7], 1 }
 0x96a   :  { %1457 = vsyncpa [#allocation5], 1 }
 0x96b   :  { %1459 = vsyncpa [#allocation5 + $0x1], 1 }
 0x96c   :  { %1460 = vsyncpa [#allocation10], 1 }
 0x96d   :  { %1462 = vsyncpa [#allocation10 + $0x1], 1 }

</bundles_post_ra>
